<compile_context>
chip_gen: v5e
topology: v5e:2x2
jax: 0.10.0
libtpu: 0.0.40
codegen_flags: <defaults>
</compile_context>

<pallas_src>
import jax
import jax.numpy as jnp
from jax.experimental import pallas as pl
from jax.experimental.pallas import tpu as pltpu

_LANE = 128


def _round_up(v, m):
    return (v + m - 1) // m * m


# ------------------------------ kernels -------------------------------------

def _finalize(acc, xdst, wl, wr, b):
    """Shared epilogue: mean aggregation, rank-1 projections, bias, ReLU."""
    agg = acc[:, 0:1]                          # neighbor feature sum
    deg = acc[:, 1:2]                          # in-degree (from the ones column)
    d_safe = jnp.where(deg > 0.0, deg, 1.0)
    inv = pl.reciprocal(d_safe, approx=True)   # EUP vrcp (free slot)
    inv = inv * (2.0 - d_safe * inv)           # one Newton step: ~1e-7 rel err
    mean = agg * inv                           # scatter_mean: 0 nbrs -> 0
    # F_in == 1 -> both projections are rank-1 VPU broadcast-multiplies.
    out = mean * wl + xdst * wr + b
    # ReLU fused; dropout is identity in eval mode.
    # TODO(synk): training-mode stochastic dropout path not emitted.
    return jnp.maximum(out, 0.0)


def sage_relu_fullrow_kernel(adj_ref, xsrc_ref, xdst_ref, wl_ref, wr_ref,
                             b_ref, out_ref):
    """One dst tile, full source row: single matmul, no accumulator."""
    acc = jnp.dot(adj_ref[...], xsrc_ref[...],
                  preferred_element_type=jnp.float32)
    out_ref[...] = _finalize(acc, xdst_ref[...], wl_ref[...], wr_ref[...],
                             b_ref[...])


def sage_relu_tiled_kernel(adj_ref, xsrc_ref, xdst_ref, wl_ref, wr_ref,
                           b_ref, out_ref, acc_ref):
    """(dst, src) grid with resident f32 accumulator — for large graphs."""
    k = pl.program_id(1)

    @pl.when(k == 0)
    def _():
        acc_ref[...] = jnp.zeros_like(acc_ref)

    # One MXU pass gives the neighbor feature sum (col 0) and the in-degree
    # (col 1, from the ones column) — no XLU row reduce needed.
    acc_ref[...] += jnp.dot(adj_ref[...], xsrc_ref[...],
                            preferred_element_type=jnp.float32)

    @pl.when(k == pl.num_programs(1) - 1)
    def _():
        out_ref[...] = _finalize(acc_ref[...], xdst_ref[...], wl_ref[...],
                                 wr_ref[...], b_ref[...])


# ------------------------------ planning ------------------------------------

def make_plan(n, *, tm=1024, tk=2048, fullrow_budget_bytes=16 << 20):
    """Pick tile sizes / path. Done once per graph size."""
    n_pad = _round_up(n, _LANE)
    tm = min(tm, n_pad)
    # v7x megacore: keep >= 2 tiles on the "parallel" dst axis when possible;
    # a single dst tile would idle the second TensorCore (2x loss on v7x).
    if n_pad // tm < 2 and n_pad >= 2 * _LANE:
        tm = _round_up((n_pad + 1) // 2, _LANE)
    n_dst = _round_up(n, tm)

    # Full-row path: one (tm, n_pad) adj block per dst tile (double-buffered
    # bf16) must fit the VMEM budget; drops the src axis + accumulator.
    if 2 * tm * n_pad * 2 <= fullrow_budget_bytes:
        return {"fullrow": True, "tm": tm, "tk": n_pad,
                "n_dst": n_dst, "n_src": n_pad}

    tk = min(tk, n_pad)
    n_src = _round_up(n, tk)
    return {"fullrow": False, "tm": tm, "tk": tk,
            "n_dst": n_dst, "n_src": n_src}


def prepare_adjacency(adj_t, plan):
    """Pad adj.t() to (n_dst, n_src) and cast to bf16 (exact for 0/1 entries).

    Call ONCE per adjacency, outside the per-forward hot path: this is the
    dominant (N,N) HBM stream and redoing the pad+cast per call ~4x's traffic.
    """
    n = adj_t.shape[0]
    adj_p = jnp.zeros((plan["n_dst"], plan["n_src"]), jnp.bfloat16)
    return adj_p.at[:n, :n].set(adj_t.astype(jnp.bfloat16))           # 0/1 exact


# ------------------------------ wrapper -------------------------------------

def sage_conv_relu(x, adj_prep, w_l, w_r, b, plan):
    """One SAGEConv(mean)+ReLU hop via pallas_call on a pre-padded adjacency.

    x        : (N, 1)            f32   node features
    adj_prep : (n_dst, n_src)    bf16  padded adj.t() from prepare_adjacency
    w_l/w_r  : (1, F_out)        f32   lin_l / lin_r weights (pre-transposed)
    b        : (1, F_out)        f32   lin_l bias
    """
    n, f_in = x.shape
    assert f_in == 1, "kernel specializes SAGEConv(1, F_out) (rank-1 projections)"
    f_out = w_l.shape[1]
    tm, tk = plan["tm"], plan["tk"]
    n_dst, n_src = plan["n_dst"], plan["n_src"]
    assert adj_prep.shape == (n_dst, n_src) and adj_prep.dtype == jnp.bfloat16

    # Node-feature padding/cast is tiny ((N,1)/(N,2)) — fine to do per call.
    # bf16 x_src is exact for this workload's 0/1 features.
    # TODO(synk): keep x_src in f32 for general-valued node features.
    x_aug = jnp.concatenate([x, jnp.ones((n, 1), x.dtype)], axis=1)   # [x | 1]
    x_src = jnp.zeros((n_src, f_in + 1), jnp.bfloat16).at[:n].set(
        x_aug.astype(jnp.bfloat16))
    x_dst = jnp.zeros((n_dst, f_in), jnp.float32).at[:n].set(
        x.astype(jnp.float32))

    # VMEM: double-buffered tiles + headroom; cap at 48 MiB (v7x has 64 MiB
    # physical), floor at 32 MiB (lifts v5e's 16 MiB default scoped limit).
    need = (2 * tm * tk * 2                 # adj (bf16, double-buffered)
            + 2 * tk * (f_in + 1) * 2       # x_src
            + 2 * tm * f_in * 4             # x_dst
            + 2 * tm * f_out * 4            # out
            + tm * (f_in + 1) * 4           # accumulator scratch
            + (4 << 20))                    # headroom
    vmem_limit = int(min(max(need, 32 << 20), 48 << 20))

    if plan["fullrow"]:
        out = pl.pallas_call(
            sage_relu_fullrow_kernel,
            out_shape=jax.ShapeDtypeStruct((n_dst, f_out), jnp.float32),
            grid_spec=pltpu.PrefetchScalarGridSpec(
                num_scalar_prefetch=0,
                grid=(n_dst // tm,),
                in_specs=[
                    pl.BlockSpec((tm, n_src), lambda i: (i, 0)),        # adj row
                    pl.BlockSpec((n_src, f_in + 1), lambda i: (0, 0)),  # [x|1]
                    pl.BlockSpec((tm, f_in), lambda i: (i, 0)),         # x dst
                    pl.BlockSpec((1, f_out), lambda i: (0, 0)),         # W_l
                    pl.BlockSpec((1, f_out), lambda i: (0, 0)),         # W_r
                    pl.BlockSpec((1, f_out), lambda i: (0, 0)),         # bias
                ],
                out_specs=pl.BlockSpec((tm, f_out), lambda i: (i, 0)),
            ),
            compiler_params=pltpu.CompilerParams(
                dimension_semantics=("parallel",),
                vmem_limit_bytes=vmem_limit),
        )(adj_prep, x_src, x_dst, w_l, w_r, b)
    else:
        out = pl.pallas_call(
            sage_relu_tiled_kernel,
            out_shape=jax.ShapeDtypeStruct((n_dst, f_out), jnp.float32),
            grid_spec=pltpu.PrefetchScalarGridSpec(
                num_scalar_prefetch=0,
                grid=(n_dst // tm, n_src // tk),
                in_specs=[
                    pl.BlockSpec((tm, tk), lambda i, k: (i, k)),        # adj
                    pl.BlockSpec((tk, f_in + 1), lambda i, k: (k, 0)),  # [x|1]
                    pl.BlockSpec((tm, f_in), lambda i, k: (i, 0)),      # x dst
                    pl.BlockSpec((1, f_out), lambda i, k: (0, 0)),      # W_l
                    pl.BlockSpec((1, f_out), lambda i, k: (0, 0)),      # W_r
                    pl.BlockSpec((1, f_out), lambda i, k: (0, 0)),      # bias
                ],
                out_specs=pl.BlockSpec((tm, f_out), lambda i, k: (i, 0)),
                scratch_shapes=[pltpu.VMEM((tm, f_in + 1), jnp.float32)],
            ),
            compiler_params=pltpu.CompilerParams(
                dimension_semantics=("parallel", "arbitrary"),
                vmem_limit_bytes=vmem_limit),
        )(adj_prep, x_src, x_dst, w_l, w_r, b)

    return out[:n]


def link_prediction_forward(x, prepared_adjs, params):
    """Mirrors LinkPredictionModel.forward (eval): conv1 -> relu -> dropout(id).

    prepared_adjs: list of (adj_prep, plan) pairs from prepare_adjacency, so the
    dominant (N,N) stream is padded/cast once, not on every forward call.
    """
    w_l, w_r, b = params["conv1_wl"], params["conv1_wr"], params["conv1_b"]
    for adj_prep, plan in prepared_adjs:
        x = sage_conv_relu(x, adj_prep, w_l, w_r, b, plan)
    return x


def init_params(key, f_in=1, f_out=16):
    """Deterministic parameter init (shapes from SAGEConv(1, 16))."""
    k1, k2 = jax.random.split(key)
    scale_l = 1.0 / jnp.sqrt(jnp.float32(f_in))
    # stored pre-transposed: (F_in, F_out) so the kernel does x (*) W
    conv1_wl = jax.random.uniform(k1, (f_in, f_out), jnp.float32,
                                  -scale_l, scale_l)
    conv1_wr = jax.random.uniform(k2, (f_in, f_out), jnp.float32,
                                  -scale_l, scale_l)
    conv1_b = jnp.zeros((1, f_out), jnp.float32)
    # conv2 = SAGEConv(16, 16) is defined in __init__ but unused in forward.
    return {"conv1_wl": conv1_wl, "conv1_wr": conv1_wr, "conv1_b": conv1_b}


if __name__ == "__main__":
    key = jax.random.PRNGKey(0)
    k_adj, k_params = jax.random.split(key)

    N = 300        # small synthetic DHG graph (multi-tile after padding)
    F_IN, F_OUT = 1, 16

    # x: [1] if node is a 'message' node else [0] (deterministic pattern)
    x = jnp.array([[1.0 if i % 2 == 0 else 0.0] for i in range(N)],
                  dtype=jnp.float32)                                   # (N, 1)

    # Dense adjacency, already transposed (adj.t()): row i = in-neighbors of i.
    adj_t = (jax.random.uniform(k_adj, (N, N)) > 0.9).astype(jnp.float32)
    adj_t = adj_t * (1.0 - jnp.eye(N, dtype=jnp.float32))              # no self-loops
    adjs_t = [adj_t]   # one hop: the only shape-consistent use of conv1(1->16)

    params = init_params(k_params, F_IN, F_OUT)

    # Pure-JAX reference of the same math (rank-1 projections as broadcasts so
    # the reference has no low-precision matmul).
    deg = jnp.sum(adj_t, axis=-1, keepdims=True)
    mean = (adj_t @ x) / jnp.where(deg > 0, deg, 1.0)
    ref = jnp.maximum(mean * params["conv1_wl"][0] + x * params["conv1_wr"][0]
                      + params["conv1_b"], 0.0)

    # Path 1: auto plan -> full-row fast path (what a graph this small selects);
    # adjacency prepared ONCE outside the forward (hoisted pad + bf16 cast).
    plans = [make_plan(a.shape[0]) for a in adjs_t]
    prepared = [(prepare_adjacency(a, p), p) for a, p in zip(adjs_t, plans)]
    out = jax.block_until_ready(link_prediction_forward(x, prepared, params))
    assert out.shape == (N, F_OUT)
    assert jnp.allclose(out, ref, atol=1e-5, rtol=1e-5)

    # Path 2: force the tiled (dst, src) accumulator path (used by big graphs)
    # to exercise the multi-step pipeline + resident accumulator.
    plan_t = make_plan(N, tm=128, tk=128, fullrow_budget_bytes=0)
    prepared_t = [(prepare_adjacency(adj_t, plan_t), plan_t)]
    out_t = jax.block_until_ready(
        link_prediction_forward(x, prepared_t, params))
    assert jnp.allclose(out_t, ref, atol=1e-5, rtol=1e-5)

    print("KERNEL_OK")
</pallas_src>

<mosaic_0001>
module attributes {stable_mosaic.version = 11 : i64} {
  func.func @sage_relu_fullrow_kernel(%arg0: i32, %arg1: memref<256x384xbf16, #tpu.memory_space<vmem>>, %arg2: memref<384x2xbf16, #tpu.memory_space<vmem>>, %arg3: memref<256x1xf32, #tpu.memory_space<vmem>>, %arg4: memref<1x16xf32, #tpu.memory_space<vmem>>, %arg5: memref<1x16xf32, #tpu.memory_space<vmem>>, %arg6: memref<1x16xf32, #tpu.memory_space<vmem>>, %arg7: memref<256x16xf32, #tpu.memory_space<vmem>>) attributes {dimension_semantics = [#tpu.dimension_semantics<parallel>], iteration_bounds = array<i64: 2>, scalar_prefetch = 0 : i64, scratch_operands = 0 : i64, tpu.core_type = #tpu.core_type<tc>, window_params = [{transform_indices = @transform_0, window_bounds = array<i64: 256, 384>}, {pipeline_mode = #tpu.pipeline_mode<synchronous>, transform_indices = @transform_1, window_bounds = array<i64: 384, 2>}, {transform_indices = @transform_2, window_bounds = array<i64: 256, 1>}, {pipeline_mode = #tpu.pipeline_mode<synchronous>, transform_indices = @transform_3, window_bounds = array<i64: 1, 16>}, {pipeline_mode = #tpu.pipeline_mode<synchronous>, transform_indices = @transform_4, window_bounds = array<i64: 1, 16>}, {pipeline_mode = #tpu.pipeline_mode<synchronous>, transform_indices = @transform_5, window_bounds = array<i64: 1, 16>}, {transform_indices = @transform_6, window_bounds = array<i64: 256, 16>}]} {
    %c0 = arith.constant 0 : index
    %c0_0 = arith.constant 0 : index
    %0 = vector.load %arg1[%c0, %c0_0] : memref<256x384xbf16, #tpu.memory_space<vmem>>, vector<256x384xbf16>
    %c0_1 = arith.constant 0 : index
    %c0_2 = arith.constant 0 : index
    %1 = vector.load %arg2[%c0_1, %c0_2] : memref<384x2xbf16, #tpu.memory_space<vmem>>, vector<384x2xbf16>
    %cst = arith.constant dense<0.000000e+00> : vector<256x2xf32>
    %2 = tpu.matmul %0, %1, %cst {dimension_numbers = #tpu.dot_dimension_numbers<[1], [0], [0], [1], [0, 0, 1, 1], [], []>} : vector<256x384xbf16>, vector<384x2xbf16>, vector<256x2xf32> -> vector<256x2xf32>
    %c0_3 = arith.constant 0 : index
    %c0_4 = arith.constant 0 : index
    %3 = vector.load %arg3[%c0_3, %c0_4] : memref<256x1xf32, #tpu.memory_space<vmem>>, vector<256x1xf32>
    %c0_5 = arith.constant 0 : index
    %c0_6 = arith.constant 0 : index
    %4 = vector.load %arg4[%c0_5, %c0_6] : memref<1x16xf32, #tpu.memory_space<vmem>>, vector<1x16xf32>
    %c0_7 = arith.constant 0 : index
    %c0_8 = arith.constant 0 : index
    %5 = vector.load %arg5[%c0_7, %c0_8] : memref<1x16xf32, #tpu.memory_space<vmem>>, vector<1x16xf32>
    %c0_9 = arith.constant 0 : index
    %c0_10 = arith.constant 0 : index
    %6 = vector.load %arg6[%c0_9, %c0_10] : memref<1x16xf32, #tpu.memory_space<vmem>>, vector<1x16xf32>
    %7 = vector.extract_strided_slice %2 {offsets = [0, 0], sizes = [256, 1], strides = [1, 1]} : vector<256x2xf32> to vector<256x1xf32>
    %8 = vector.extract_strided_slice %2 {offsets = [0, 1], sizes = [256, 1], strides = [1, 1]} : vector<256x2xf32> to vector<256x1xf32>
    %cst_11 = arith.constant 0.000000e+00 : f32
    %9 = vector.broadcast %cst_11 : f32 to vector<256x1xf32>
    %10 = arith.cmpf ogt, %8, %9 : vector<256x1xf32>
    %cst_12 = arith.constant 1.000000e+00 : f32
    %11 = vector.broadcast %cst_12 : f32 to vector<256x1xf32>
    %12 = arith.select %10, %8, %11 : vector<256x1xi1>, vector<256x1xf32>
    %13 = tpu.reciprocal %12 {approx = true} : vector<256x1xf32> -> vector<256x1xf32>
    %14 = arith.mulf %12, %13 : vector<256x1xf32>
    %cst_13 = arith.constant 2.000000e+00 : f32
    %15 = vector.broadcast %cst_13 : f32 to vector<256x1xf32>
    %16 = arith.subf %15, %14 : vector<256x1xf32>
    %17 = arith.mulf %13, %16 : vector<256x1xf32>
    %18 = arith.mulf %7, %17 : vector<256x1xf32>
    %19 = vector.broadcast %18 : vector<256x1xf32> to vector<256x16xf32>
    %20 = vector.broadcast %4 : vector<1x16xf32> to vector<256x16xf32>
    %21 = arith.mulf %19, %20 : vector<256x16xf32>
    %22 = vector.broadcast %3 : vector<256x1xf32> to vector<256x16xf32>
    %23 = vector.broadcast %5 : vector<1x16xf32> to vector<256x16xf32>
    %24 = arith.mulf %22, %23 : vector<256x16xf32>
    %25 = arith.addf %21, %24 : vector<256x16xf32>
    %26 = vector.broadcast %6 : vector<1x16xf32> to vector<256x16xf32>
    %27 = arith.addf %25, %26 : vector<256x16xf32>
    %cst_14 = arith.constant 0.000000e+00 : f32
    %28 = vector.broadcast %cst_14 : f32 to vector<256x16xf32>
    %29 = arith.maximumf %27, %28 : vector<256x16xf32>
    %c0_15 = arith.constant 0 : index
    %c0_16 = arith.constant 0 : index
    %30 = vector.load %arg7[%c0_15, %c0_16] : memref<256x16xf32, #tpu.memory_space<vmem>>, vector<256x16xf32>
    tpu.vector_store %arg7[%c0_15, %c0_16], %29 {strides = array<i32>} : memref<256x16xf32, #tpu.memory_space<vmem>>, vector<256x16xf32>,
    return
  }
  func.func @transform_0(%arg0: i32) -> (i32, i32) {
    %c0_i32 = arith.constant 0 : i32
    %c0_i32_0 = arith.constant 0 : i32
    return %arg0, %c0_i32 : i32, i32
  }
  func.func @transform_1(%arg0: i32) -> (i32, i32) {
    %c0_i32 = arith.constant 0 : i32
    %c0_i32_0 = arith.constant 0 : i32
    %c0_i32_1 = arith.constant 0 : i32
    return %c0_i32, %c0_i32_0 : i32, i32
  }
  func.func @transform_2(%arg0: i32) -> (i32, i32) {
    %c0_i32 = arith.constant 0 : i32
    %c0_i32_0 = arith.constant 0 : i32
    return %arg0, %c0_i32 : i32, i32
  }
  func.func @transform_3(%arg0: i32) -> (i32, i32) {
    %c0_i32 = arith.constant 0 : i32
    %c0_i32_0 = arith.constant 0 : i32
    %c0_i32_1 = arith.constant 0 : i32
    return %c0_i32, %c0_i32_0 : i32, i32
  }
  func.func @transform_4(%arg0: i32) -> (i32, i32) {
    %c0_i32 = arith.constant 0 : i32
    %c0_i32_0 = arith.constant 0 : i32
    %c0_i32_1 = arith.constant 0 : i32
    return %c0_i32, %c0_i32_0 : i32, i32
  }
  func.func @transform_5(%arg0: i32) -> (i32, i32) {
    %c0_i32 = arith.constant 0 : i32
    %c0_i32_0 = arith.constant 0 : i32
    %c0_i32_1 = arith.constant 0 : i32
    return %c0_i32, %c0_i32_0 : i32, i32
  }
  func.func @transform_6(%arg0: i32) -> (i32, i32) {
    %c0_i32 = arith.constant 0 : i32
    %c0_i32_0 = arith.constant 0 : i32
    return %arg0, %c0_i32 : i32, i32
  }
}

</mosaic_0001>

<bundles_post_ra>
// kernel: tpu_custom_call.1
= control target key start
LH: loop header
LB: loop body
LE: loop exit
PB: predicated region body
PF: predicated region fallthrough
CT: control target
= control target key end

     0   :  { %11 = vsyncpa [#allocation3], 0  ;;  %s3555_s0 = inlined_call_operand.hbm [shape: bf16[512,384], index: 0, kind: input, shape index: {}]   ;;  %s3556_s1 = inlined_call_operand.vmem [shape: bf16[384,2], index: 1, kind: input, shape index: {}]   ;;  %s3557_s2 = inlined_call_operand.vmem [shape: f32[512,1], index: 2, kind: input, shape index: {}]   ;;  %s3558_s3 = inlined_call_operand.vmem [shape: f32[1,16], index: 3, kind: input, shape index: {}]   ;;  %s3559_s4 = inlined_call_operand.vmem [shape: f32[1,16], index: 4, kind: input, shape index: {}]   ;;  %s3560_s5 = inlined_call_operand.vmem [shape: f32[1,16], index: 5, kind: input, shape index: {}]   ;;  %s3561_s6 = inlined_call_operand.vmem [shape: f32[512,16], index: 6, kind: output, shape index: {}]  }
   0x1   :  { %13 = vsyncpa [#allocation3 + $0x1], 0  ;;  %s2685_s21 = smov 0   ;;  %s2687_s22 = smov 0  }
   0x2   :  { %s2689_s23 = smov 0   ;;  %s2691_s24 = smov 0  }
   0x3 LB: > { %s2066_s25 = sadd.s32 4294967295, %s2644_s24   ;;  %s2705_s26 = sadd.s32 1, %s2644_s24   ;;  %s2644_s24 = sphi %s2691_s24, %s3599_s24   ;;  %s2640_s23 = sphi %s2689_s23, %s3598_s23   ;;  %s2636_s22 = sphi %s2687_s22, %s3597_s22   ;;  %s2632_s21 = sphi %s2685_s21, %s3596_s21  }
   0x4   : > { %s23_s27 = ssub.s32 %s2644_s24, %s2705_s26  ;;  %s26_s28 = sadd.s32 1, %s2640_s23 }
   0x5   : > { %p24_p0 = scmp.eq.s32.totalorder %s23_s27, 0  ;;  %p33_p1 = scmp.ne.s32.totalorder %s2640_s23, %s2636_s22 }
   0x6   : > { %p34_p2 = scmp.eq.s32.totalorder %s2644_s24, 0  ;;  %p39_p3 = scmp.ne.s32.totalorder %s2636_s22, %s2632_s21 }
   0x7   : > { %s2715_s29 = scalar_select %p24_p0, %s2640_s23, %s26_s28  }
   0x8   : > { %p35_p4 = por %p34_p2, %p33_p1  ;;  %p40_p5 = scmp.eq.s32.totalorder %s2066_s25, 0 }
   0x9   : > { %p2473_p6 = scmp.lt.s32.totalorder %s2644_s24, 2  ;;  %s211_s7 = sand.u32 1, %s2640_s23  }
   0xa   : > { %p2720_p7 = por %p40_p5, %p39_p3  ;;  %s2464_s8 = smul.u32 384, %s211_s7 }
   0xb   : > { %s2465_s9 = smul.u32 384, %s2644_s24  ;;  %p2726_p8 = pnand %p2473_p6, %p35_p4 }
   0xc   : > { %s215_s14 = scalar_lea.vmem [#allocation2], %s2464_s8  ;;  %p2073_p9 = scmp.ge.s32.totalorder %s2644_s24, 1 }
   0xd   : > { %s221_s13 = scalar_lea.hbm %s3555_s0, %s2465_s9  ;;  %s224_s15 = sshll.u32 %s215_s14, 4  ;;  %s225_s15 = int_to_ptr.vmem [resolvable:$true] %s224_s15 }
   0xe   : > { %s222_s16 = sshll.u32 %s221_s13, 4  ;;  %s212_s17 = scalar_lea.sflag [#allocation3], %s211_s7  ;;  %s223_s16 = int_to_ptr.hbm [resolvable:$true] %s222_s16 }
   0xf   : > { %s2580_s18 = sshra.s32 %s223_s16, 4  ;;  %p2584_p11 = pneg %p2726_p8  ;;  %s2581_s18 = int_to_ptr.hbm [resolvable:$true] %s2580_s18 }
  0x10   : > { %s2582_s19 = scalar_lea.hbm %s2581_s18, 384  ;;  %s2587_s27 = scalar_lea.hbm %s3555_s0, 768 }
  0x11   : > { %p2583_p10 = scmp.ne.s32.totalorder %s2581_s18, %s2582_s19  ;;  %p2588_p0 = scmp.lt.s32.totalorder %s2581_s18, %s3555_s0 }
  0x12   : > { %p2589_p1 = scmp.lt.s32.totalorder %s2587_s27, %s2582_s19 }
  0x13   : > { %p2585_p12 = pnand %p2584_p11, %p2583_p10 }
  0x14   : > { %p2590_p2 = por %p2589_p1, %p2588_p0 }
  0x15   : > { %p2586_p13 = pneg %p2585_p12 }
  0x17   : > { %p2591_p3 = pnand %p2590_p2, %p2586_p13 }
  0x19   : > { %2594 = shalt.err (!%p2591_p3)
}
  0x1a   : > { %s2646_s7 = smov 192   ;;  %s2647_s9 = smov 12  }
  0x1b   : > { %2472 = dma.hbm_to_vmem [thread:$0]  (!%p2726_p8), %s223_s16, 6144, %s225_s15, %s212_s17, %s2646_s7, %s2646_s7, %s2647_s9  }
  0x1c   : > { %p241_p4 = scmp.lt.s32.totalorder %s2644_s24, 3 }
  0x1e   : > { %p242_p5 = pnand %p2073_p9, %p241_p4 }
  0x20   : > { %245 = sbr.rel (%p242_p5) target bundleno = 666 (0x29a), region = 44 }
  0x25   : > { %s247_s11 = sand.u32 1, %s2636_s22  }
  0x26   : > { %s2466_s12 = smul.u32 384, %s247_s11  ;;  %s248_s13 = scalar_lea.sflag [#allocation3], %s247_s11 }
  0x28   : > { %s2748_s14 = scalar_lea.vmem [#allocation2], %s2466_s12 }
  0x29   : > { %2627 = dma.done.wait (%p2720_p7), %s248_s13, 6144  }
  0x2a   : > { %2629 = vsyncadd (%p2720_p7), %s248_s13, 4294961152  ;;  %s2074_s10 = sshll.u32 %s2066_s25, 5  ;;  %v2423_v0 = vld [vmem:[%s3556_s1 + $0x38] sm:$0xff]  ;;  %v2422_v3 = vld [vmem:[%s3556_s1 + $0x30] sm:$0xff]  ;;  %v2648_v6 = vmov 0   ;;  %s2649_s16 = smov 127  }
  0x2b   : > { %p288_p6 = scmp.lt.s32.totalorder %s2074_s10, 63  ;;  %v2762_v1 = vld [vmem:[%s3556_s1 + $0x78] sm:$0xff]  ;;  %811 = vmatpush.bf16.msra.mxu0 %v2423_v0  ;;  %2440 = vmatpush.bf16.msra.mxu3 %v2423_v0  ;;  %v2779_v4 = vld [vmem:[%s3556_s1 + $0x70] sm:$0xff]  ;;  %v2421_v7 = vld [vmem:[%s3556_s1 + $0x28] sm:$0xff] }
  0x2c   : > { %v2767_v2 = vld [vmem:[%s3556_s1 + $0xb8] sm:$0xff]  ;;  %900 = vmatpush.bf16.msra.mxu1 %v2762_v1  ;;  %v2784_v5 = vld [vmem:[%s3556_s1 + $0xb0] sm:$0xff]  ;;  %2511 = vset.pattern.permute.xlu0 %v2648_v6  ;;  %v2795_v8 = vld [vmem:[%s3556_s1 + $0x68] sm:$0xff] }
  0x2d   : > { %s3601_s10 = smov (!%p288_p6, %s2074_s10), 63  ;;  %989 = vmatpush.bf16.msra.mxu2 %v2767_v2  ;;  %2512 = vset.pattern.permute.xlu1 %v2648_v6  ;;  %v2800_v9 = vld [vmem:[%s3556_s1 + $0xa8] sm:$0xff]  ;;  %v2420_v10 = vld [vmem:[%s3556_s1 + $0x20] sm:$0xff]  ;;  %v2419_v14 = vld [vmem:[%s3556_s1 + $0x18] sm:$0xff] }
  0x2e   : > { %s2075_s8 = sshll.u32 %s3601_s10, 3  ;;  %2510 = vset.pattern.permute.xlu2 %v2648_v6  ;;  %v2818_v12 = vld [vmem:[%s3556_s1 + $0x60] sm:$0xff]  ;;  %v2833_v15 = vld [vmem:[%s3556_s1 + $0x58] sm:$0xff]  ;;  %v2418_v17 = vld [vmem:[%s3556_s1 + $0x10] sm:$0xff] }
  0x2f   : > { %812 = vmatpush.bf16.msra.mxu0 %v2422_v3  ;;  %2441 = vmatpush.bf16.msra.mxu3 %v2422_v3  ;;  %s2807_s18 = scalar_lea.vmem %s3557_s2, %s2075_s8  ;;  %v2823_v13 = vld [vmem:[%s3556_s1 + $0xa0] sm:$0xff]  ;;  %v2838_v16 = vld [vmem:[%s3556_s1 + $0x98] sm:$0xff]  ;;  %v2850_v20 = vld [vmem:[%s3556_s1 + $0x50] sm:$0xff]  ;;  %s3331_s27 = scalar_lea.vmem %s3561_s6, %s2075_s8 }
  0x30   : > { %901 = vmatpush.bf16.msra.mxu1 %v2779_v4  ;;  %v1079_v11 = vld [vmem:[%s2807_s18 + $0x8] sm:$0xff]  ;;  %v1082_v18 = vld [vmem:[%s2807_s18 + $0x20] sm:$0xff]  ;;  %v1080_v19 = vld [vmem:[%s2807_s18 + $0x10] sm:$0xff] }
  0x31   : > { %990 = vmatpush.bf16.msra.mxu2 %v2784_v5  ;;  %1667 = vperm.xlu0 %2511, %v1079_v11   ;;  %v2855_v21 = vld [vmem:[%s3556_s1 + $0x90] sm:$0xff]  ;;  %v2417_v22 = vld [vmem:[%s3556_s1 + $0x8] sm:$0xff]  ;;  %v2416_v25 = vld [vmem:[%s3556_s1] sm:$0xff] }
  0x32   : > { %1672 = vperm.xlu1 %2512, %v1080_v19   ;;  %v2865_v23 = vld [vmem:[%s3556_s1 + $0x48] sm:$0xff]  ;;  %v2878_v26 = vld [vmem:[%s3556_s1 + $0x40] sm:$0xff]  ;;  %v1085_v30 = vld [vmem:[%s2807_s18 + $0x38] sm:$0xff] }
  0x33   : > { %813 = vmatpush.bf16.msra.mxu0 %v2421_v7  ;;  %2442 = vmatpush.bf16.msra.mxu3 %v2421_v7  ;;  %v2870_v24 = vld [vmem:[%s3556_s1 + $0x88] sm:$0xff]  ;;  %v2883_v27 = vld [vmem:[%s3556_s1 + $0x80] sm:$0xff]  ;;  %v2082_v34 = vld [vmem:[%s2748_s14 + $0xc] sm:$0xf0] }
  0x34   : > { %902 = vmatpush.bf16.msra.mxu1 %v2795_v8  ;;  %v2080_v28 = vld [vmem:[%s2748_s14] sm:$0xf]  ;;  %v2369_v29 = vld [vmem:[%s2748_s14 + $0x8] sm:$0xf0]  ;;  %v2368_v33 = vld [vmem:[%s2748_s14 + $0x4] sm:$0xf] }
  0x35   : > { %991 = vmatpush.bf16.msra.mxu2 %v2800_v9  ;;  %v2224_v31 = vld [vmem:[%s2748_s14 + $0x120] sm:$0xf]  ;;  %v2405_v32 = vld [vmem:[%s2748_s14 + $0x128] sm:$0xf0]  ;;  %v2088_v35 = vld [vmem:[%s2748_s14 + $0x8] sm:$0xf]  ;;  %v2081_v37 = vor.u32 %v2369_v29, %v2080_v28  ;;  %v2085_v39 = vor.u32 %v2368_v33, %v2082_v34 }
  0x36   : > { %v2370_v36 = vld [vmem:[%s2748_s14 + $0x10] sm:$0xf0]  ;;  %v2225_v38 = vor.u32 %v2405_v32, %v2224_v31  ;;  %v1083_v41 = vld [vmem:[%s2807_s18 + $0x28] sm:$0xff]  ;;  %v1086_v43 = vld [vmem:[%s2807_s18 + $0x40] sm:$0xff] }
  0x37   : > { %814 = vmatpush.bf16.msra.mxu0 %v2420_v10  ;;  %2443 = vmatpush.bf16.msra.mxu3 %v2420_v10  ;;  %v2089_v40 = vor.u32 %v2370_v36, %v2088_v35  ;;  %v1088_v42 = vld [vmem:[%s2807_s18 + $0x50] sm:$0xff]  ;;  %v2092_v44 = vld [vmem:[%s2748_s14 + $0x18] sm:$0xf]  ;;  %v2372_v45 = vld [vmem:[%s2748_s14 + $0x20] sm:$0xf0] }
  0x38   : > { %903 = vmatpush.bf16.msra.mxu1 %v2818_v12  ;;  %v1091_v46 = vld [vmem:[%s2807_s18 + $0x68] sm:$0xff]  ;;  %v2236_v47 = vld [vmem:[%s2748_s14 + $0x138] sm:$0xf]  ;;  %v2408_v48 = vld [vmem:[%s2748_s14 + $0x140] sm:$0xf0]  ;;  %v2093_v53 = vor.u32 %v2372_v45, %v2092_v44 }
  0x39   : > { %992 = vmatpush.bf16.msra.mxu2 %v2823_v13  ;;  %1682 = vperm.xlu0 %2511, %v1082_v18   ;;  %v2371_v49 = vld [vmem:[%s2748_s14 + $0x1c] sm:$0xf]  ;;  %v2094_v50 = vld [vmem:[%s2748_s14 + $0x24] sm:$0xf0]  ;;  %v2100_v51 = vld [vmem:[%s2748_s14 + $0x20] sm:$0xf]  ;;  %v2237_v54 = vor.u32 %v2408_v48, %v2236_v47 }
  0x3a   : > { %1687 = vperm.xlu1 %2512, %v1083_v41   ;;  %v2373_v52 = vld [vmem:[%s2748_s14 + $0x28] sm:$0xf0]  ;;  %v2097_v55 = vor.u32 %v2371_v49, %v2094_v50  ;;  %v1089_v57 = vld [vmem:[%s2807_s18 + $0x58] sm:$0xff]  ;;  %v1094_v58 = vld [vmem:[%s2807_s18 + $0x80] sm:$0xff] }
  0x3b   : > { %815 = vmatpush.bf16.msra.mxu0 %v2419_v14  ;;  %2444 = vmatpush.bf16.msra.mxu3 %v2419_v14  ;;  %v2101_v56 = vor.u32 %v2373_v52, %v2100_v51  ;;  %v1078_v59 = vld [vmem:[%s2807_s18] sm:$0xff]  ;;  %v1092_v60 = vld [vmem:[%s2807_s18 + $0x70] sm:$0xff]  ;;  %v1081_v61 = vld [vmem:[%s2807_s18 + $0x18] sm:$0xff] }
  0x3c   : > { %904 = vmatpush.bf16.msra.mxu1 %v2833_v15  ;;  %1662 = vperm.xlu2 %2510, %v1078_v59   ;;  %v2104_v62 = vld [vmem:[%s2748_s14 + $0x30] sm:$0xf]  ;;  %v2375_v63 = vld [vmem:[%s2748_s14 + $0x38] sm:$0xf0]  ;;  %v2106_v6 = vld [vmem:[%s2748_s14 + $0x3c] sm:$0xf0] }
  0x3d   : > { %993 = vmatpush.bf16.msra.mxu2 %v2838_v16  ;;  %v1097_v0 = vld [vmem:[%s2807_s18 + $0x98] sm:$0xff]  ;;  %v2105_v10 = vor.u32 %v2375_v63, %v2104_v62  ;;  %v1084_v18 = vld [vmem:[%s2807_s18 + $0x30] sm:$0xff]  ;;  %v1087_v19 = vld [vmem:[%s2807_s18 + $0x48] sm:$0xff] }
  0x3e   : > { %v2411_v3 = vld [vmem:[%s2748_s14 + $0x158] sm:$0xf0]  ;;  %v2112_v7 = vld [vmem:[%s2748_s14 + $0x38] sm:$0xf]  ;;  %v2377_v28 = vld [vmem:[%s2748_s14 + $0x4c] sm:$0xf] }
  0x3f   : > { %816 = vmatpush.bf16.msra.mxu0 %v2418_v17  ;;  %2445 = vmatpush.bf16.msra.mxu3 %v2418_v17  ;;  %v1100_v17 = vld [vmem:[%s2807_s18 + $0xb0] sm:$0xff]  ;;  %v2118_v29 = vld [vmem:[%s2748_s14 + $0x54] sm:$0xf0]  ;;  %v2379_v31 = vld [vmem:[%s2748_s14 + $0x58] sm:$0xf0] }
  0x40   : > { %905 = vmatpush.bf16.msra.mxu1 %v2850_v20  ;;  %v2121_v32 = vor.u32 %v2377_v28, %v2118_v29  ;;  %v1101_v34 = vld [vmem:[%s2807_s18 + $0xb8] sm:$0xff]  ;;  %v1090_v35 = vld [vmem:[%s2807_s18 + $0x60] sm:$0xff]  ;;  %v2226_v41 = vld [vmem:[%s2748_s14 + $0x12c] sm:$0xf0] }
  0x41   : > { %994 = vmatpush.bf16.msra.mxu2 %v2855_v21  ;;  %1697 = vperm.xlu0 %2511, %v1085_v30   ;;  %v2124_v30 = vld [vmem:[%s2748_s14 + $0x50] sm:$0xf]  ;;  %v1093_v36 = vld [vmem:[%s2807_s18 + $0x78] sm:$0xff]  ;;  %v2382_v44 = vld [vmem:[%s2748_s14 + $0x70] sm:$0xf0] }
  0x42   : > { %1702 = vperm.xlu1 %2512, %v1086_v43   ;;  %v2125_v33 = vor.u32 %v2379_v31, %v2124_v30  ;;  %v2136_v43 = vld [vmem:[%s2748_s14 + $0x68] sm:$0xf]  ;;  %v1096_v47 = vld [vmem:[%s2807_s18 + $0x90] sm:$0xff]  ;;  %v2140_v49 = vld [vmem:[%s2748_s14 + $0x78] sm:$0xf] }
  0x43   : > { %817 = vmatpush.bf16.msra.mxu0 %v2417_v22  ;;  %2446 = vmatpush.bf16.msra.mxu3 %v2417_v22  ;;  %v2378_v22 = vld [vmem:[%s2748_s14 + $0x50] sm:$0xf0]  ;;  %v1099_v48 = vld [vmem:[%s2807_s18 + $0xa8] sm:$0xff]  ;;  %v2384_v50 = vld [vmem:[%s2748_s14 + $0x80] sm:$0xf0] }
  0x44   : > { %906 = vmatpush.bf16.msra.mxu1 %v2865_v23  ;;  %1677 = vperm.xlu2 %2510, %v1081_v61   ;;  %v2383_v51 = vld [vmem:[%s2748_s14 + $0x7c] sm:$0xf]  ;;  %v2238_v52 = vld [vmem:[%s2748_s14 + $0x144] sm:$0xf0]  ;;  %v2152_v61 = vld [vmem:[%s2748_s14 + $0x90] sm:$0xf] }
  0x45   : > { %995 = vmatpush.bf16.msra.mxu2 %v2870_v24  ;;  %v2387_v62 = vld [vmem:[%s2748_s14 + $0x98] sm:$0xf0]  ;;  %v2386_v63 = vld [vmem:[%s2748_s14 + $0x94] sm:$0xf]  ;;  %v2176_v29 = vld [vmem:[%s2748_s14 + $0xc0] sm:$0xf] }
  0x46   : > { %v2393_v30 = vld [vmem:[%s2748_s14 + $0xc8] sm:$0xf0]  ;;  %v2392_v31 = vld [vmem:[%s2748_s14 + $0xc4] sm:$0xf] }
  0x47   : > { %818 = vmatpush.bf16.msra.mxu0 %v2416_v25  ;;  %2447 = vmatpush.bf16.msra.mxu3 %v2416_v25  ;;  %v2260_v25 = vld [vmem:[%s2748_s14 + $0x168] sm:$0xf] }
  0x48   : > { %907 = vmatpush.bf16.msra.mxu1 %v2878_v26 }
  0x49   : > { %996 = vmatpush.bf16.msra.mxu2 %v2883_v27  ;;  %1712 = vperm.xlu0 %2511, %v1088_v42   ;;  %v2130_v42 = vld [vmem:[%s2748_s14 + $0x6c] sm:$0xf0] }
  0x4a   : > { %819 = vmatmul.bf16.vlgmr.msra.gmra.mxu0 %v2081_v37  ;;  %879 = vmatmul.bf16.vlgmr.msra.gmra.mxu3 %v2225_v38  ;;  %v2128_v37 = vld [vmem:[%s2748_s14 + $0x60] sm:$0xf]  ;;  %v2381_v38 = vld [vmem:[%s2748_s14 + $0x68] sm:$0xf0] }
  0x4b   : > { %2448 = vmatpush.bf16.msrb.mxu3 %v2762_v1  ;;  %908 = vmatmul.bf16.vlgmr.msra.gmra.mxu1 %v2085_v39  ;;  %v2248_v1 = vld [vmem:[%s2748_s14 + $0x150] sm:$0xf]  ;;  %v2380_v39 = vld [vmem:[%s2748_s14 + $0x64] sm:$0xf] }
  0x4c   : > { %997 = vmatmul.bf16.vlgmr.msra.gmra.mxu2 %v2089_v40  ;;  %1717 = vperm.xlu1 %2512, %v1089_v57   ;;  %v2249_v11 = vor.u32 %v2411_v3, %v2248_v1  ;;  %v2404_v40 = vld [vmem:[%s2748_s14 + $0x124] sm:$0xf]  ;;  %v2133_v45 = vor.u32 %v2380_v39, %v2130_v42  ;;  %v2250_v1 = vld [vmem:[%s2748_s14 + $0x15c] sm:$0xf0] }
  0x4d   : > { %1692 = vperm.xlu2 %2510, %v1084_v18   ;;  %v2154_v3 = vld [vmem:[%s2748_s14 + $0x9c] sm:$0xf0]  ;;  %v2413_v18 = vld [vmem:[%s2748_s14 + $0x16c] sm:$0xf] }
  0x4f   : > { %2449 = vmatpush.bf16.msrb.mxu3 %v2779_v4  ;;  %v2374_v4 = vld [vmem:[%s2748_s14 + $0x34] sm:$0xf] }
  0x51   : > { %1727 = vperm.xlu0 %2511, %v1091_v46   ;;  %v2137_v46 = vor.u32 %v2382_v44, %v2136_v43 }
  0x53   : > { %2450 = vmatpush.bf16.msrb.mxu3 %v2795_v8  ;;  %v2376_v8 = vld [vmem:[%s2748_s14 + $0x40] sm:$0xf0] }
  0x54   : > { %1732 = vperm.xlu1 %2512, %v1092_v60   ;;  %v2113_v14 = vor.u32 %v2376_v8, %v2112_v7  ;;  %v1102_v60 = vld [vmem:[%s2807_s18 + $0xc0] sm:$0xff]  ;;  %v2153_v7 = vor.u32 %v2387_v62, %v2152_v61 }
  0x55   : > { %1707 = vperm.xlu2 %2510, %v1087_v19   ;;  %v2166_v19 = vld [vmem:[%s2748_s14 + $0xb4] sm:$0xf0] }
  0x57   : > { %2451 = vmatpush.bf16.msrb.mxu3 %v2818_v12  ;;  %v2109_v12 = vor.u32 %v2374_v4, %v2106_v6  ;;  %v2160_v4 = vld [vmem:[%s2748_s14 + $0x98] sm:$0xf]  ;;  %v2388_v6 = vld [vmem:[%s2748_s14 + $0xa0] sm:$0xf0] }
  0x59   : > { %1742 = vperm.xlu0 %2511, %v1094_v58  }
  0x5a   : > { %824 = vmatmul.bf16.gmra.mxu0 %v2093_v53  ;;  %884 = vmatmul.bf16.gmra.mxu3 %v2237_v54  ;;  %v2142_v53 = vld [vmem:[%s2748_s14 + $0x84] sm:$0xf0]  ;;  %v2148_v54 = vld [vmem:[%s2748_s14 + $0x80] sm:$0xf] }
  0x5b   : > { %2452 = vmatpush.bf16.msrb.mxu3 %v2833_v15  ;;  %913 = vmatmul.bf16.gmra.mxu1 %v2097_v55  ;;  %v1095_v15 = vld [vmem:[%s2807_s18 + $0x88] sm:$0xff]  ;;  %v2145_v58 = vor.u32 %v2383_v51, %v2142_v53 }
  0x5c   : > { %1002 = vmatmul.bf16.gmra.mxu2 %v2101_v56  ;;  %1747 = vperm.xlu1 %2512, %v1095_v15   ;;  %v2385_v55 = vld [vmem:[%s2748_s14 + $0x88] sm:$0xf0]  ;;  %v2141_v56 = vor.u32 %v2384_v50, %v2140_v49  ;;  %v2390_v15 = vld [vmem:[%s2748_s14 + $0xb0] sm:$0xf0]  ;;  %v2395_v50 = vld [vmem:[%s2748_s14 + $0xdc] sm:$0xf] }
  0x5d   : > { %1722 = vperm.xlu2 %2510, %v1090_v35   ;;  %v2149_v59 = vor.u32 %v2385_v55, %v2148_v54  ;;  %v2397_v49 = vld [vmem:[%s2748_s14 + $0xe8] sm:$0xf0]  ;;  %v2190_v51 = vld [vmem:[%s2748_s14 + $0xe4] sm:$0xf0] }
  0x5f   : > { %2453 = vmatpush.bf16.msrb.mxu3 %v2850_v20  ;;  %v2116_v20 = vld [vmem:[%s2748_s14 + $0x48] sm:$0xf] }
  0x61   : > { %1757 = vperm.xlu0 %2511, %v1097_v0   ;;  %v2410_v0 = vld [vmem:[%s2748_s14 + $0x154] sm:$0xf] }
  0x62   : > { %v2253_v8 = vor.u32 %v2410_v0, %v2250_v1 }
  0x63   : > { %2454 = vmatpush.bf16.msrb.mxu3 %v2865_v23  ;;  %v1103_v23 = vld [vmem:[%s2807_s18 + $0xc8] sm:$0xff] }
  0x65   : > { %1737 = vperm.xlu2 %2510, %v1093_v36  }
  0x67   : > { %2455 = vmatpush.bf16.msrb.mxu3 %v2878_v26  ;;  %v2414_v26 = vld [vmem:[%s2748_s14 + $0x170] sm:$0xf0] }
  0x69   : > { %1772 = vperm.xlu0 %2511, %v1100_v17   ;;  %v2389_v17 = vld [vmem:[%s2748_s14 + $0xac] sm:$0xf] }
  0x6a   : > { %829 = vmatmul.bf16.gmra.mxu0 %v2105_v10  ;;  %889 = vmatmul.bf16.gmra.mxu3 %v2249_v11  ;;  %v2157_v10 = vor.u32 %v2386_v63, %v2154_v3  ;;  %v2161_v11 = vor.u32 %v2388_v6, %v2160_v4 }
  0x6b   : > { %2456 = vmatpush.bf16.msra.mxu3 %v2767_v2  ;;  %918 = vmatmul.bf16.gmra.mxu1 %v2109_v12  ;;  %v1098_v2 = vld [vmem:[%s2807_s18 + $0xa0] sm:$0xff]  ;;  %v1105_v12 = vld [vmem:[%s2807_s18 + $0xd8] sm:$0xff] }
  0x6c   : > { %1007 = vmatmul.bf16.gmra.mxu2 %v2113_v14  ;;  %1762 = vperm.xlu1 %2512, %v1098_v2   ;;  %v2164_v14 = vld [vmem:[%s2748_s14 + $0xa8] sm:$0xf]  ;;  %v2262_v2 = vld [vmem:[%s2748_s14 + $0x174] sm:$0xf0] }
  0x6d   : > { %1752 = vperm.xlu2 %2510, %v1096_v47   ;;  %v2188_v47 = vld [vmem:[%s2748_s14 + $0xd8] sm:$0xf] }
  0x6f   : > { %2457 = vmatpush.bf16.msra.mxu3 %v2784_v5  ;;  %v2117_v5 = vor.u32 %v2378_v22, %v2116_v20  ;;  %v2172_v20 = vld [vmem:[%s2748_s14 + $0xb0] sm:$0xf]  ;;  %v2391_v22 = vld [vmem:[%s2748_s14 + $0xb8] sm:$0xf0] }
  0x70   : > { %v2173_v28 = vor.u32 %v2391_v22, %v2172_v20  ;;  %v2399_v20 = vld [vmem:[%s2748_s14 + $0xf8] sm:$0xf0] }
  0x71   : > { %1787 = vperm.xlu0 %2511, %v1103_v23   ;;  %v2165_v23 = vor.u32 %v2390_v15, %v2164_v14  ;;  %v2208_v15 = vld [vmem:[%s2748_s14 + $0xf8] sm:$0xf] }
  0x73   : > { %2458 = vmatpush.bf16.msra.mxu3 %v2800_v9  ;;  %v2261_v9 = vor.u32 %v2414_v26, %v2260_v25  ;;  %v2265_v25 = vor.u32 %v2413_v18, %v2262_v2  ;;  %v2169_v26 = vor.u32 %v2389_v17, %v2166_v19  ;;  %v2400_v17 = vld [vmem:[%s2748_s14 + $0x100] sm:$0xf0]  ;;  %v2256_v18 = vld [vmem:[%s2748_s14 + $0x158] sm:$0xf]  ;;  %v2200_v19 = vld [vmem:[%s2748_s14 + $0xf0] sm:$0xf] }
  0x74   : > { %1777 = vperm.xlu1 %2512, %v1101_v34   ;;  %v2394_v34 = vld [vmem:[%s2748_s14 + $0xd0] sm:$0xf0]  ;;  %v2412_v2 = vld [vmem:[%s2748_s14 + $0x160] sm:$0xf0] }
  0x75   : > { %1767 = vperm.xlu2 %2510, %v1099_v48   ;;  %v2396_v48 = vld [vmem:[%s2748_s14 + $0xe0] sm:$0xf0] }
  0x76   : > { %v2189_v55 = vor.u32 %v2396_v48, %v2188_v47 }
  0x77   : > { %2459 = vmatpush.bf16.msra.mxu3 %v2823_v13  ;;  %v1106_v13 = vld [vmem:[%s2807_s18 + $0xe0] sm:$0xff] }
  0x79   : > { %1802 = vperm.xlu0 %2511, %v1106_v13   ;;  %v2177_v13 = vor.u32 %v2393_v30, %v2176_v29 }
  0x7a   : > { %834 = vmatmul.bf16.gmra.mxu0 %v2117_v5  ;;  %894 = vmatmul.bf16.gmra.mxu3 %v2261_v9  ;;  %v2232_v5 = vld [vmem:[%s2748_s14 + $0x128] sm:$0xf]  ;;  %v2406_v9 = vld [vmem:[%s2748_s14 + $0x130] sm:$0xf0] }
  0x7b   : > { %2460 = vmatpush.bf16.msra.mxu3 %v2838_v16  ;;  %923 = vmatmul.bf16.gmra.mxu1 %v2121_v32  ;;  %v1104_v16 = vld [vmem:[%s2807_s18 + $0xd0] sm:$0xff]  ;;  %v2233_v35 = vor.u32 %v2406_v9, %v2232_v5  ;;  %v2201_v5 = vor.u32 %v2399_v20, %v2200_v19 }
  0x7c   : > { %1012 = vmatmul.bf16.gmra.mxu2 %v2125_v33  ;;  %1792 = vperm.xlu1 %2512, %v1104_v16   ;;  %v2178_v32 = vld [vmem:[%s2748_s14 + $0xcc] sm:$0xf0]  ;;  %v2184_v33 = vld [vmem:[%s2748_s14 + $0xc8] sm:$0xf] }
  0x7d   : > { %1782 = vperm.xlu2 %2510, %v1102_v60   ;;  %v2181_v36 = vor.u32 %v2392_v31, %v2178_v32  ;;  %v2257_v31 = vor.u32 %v2412_v2, %v2256_v18 }
  0x7f   : > { %2461 = vmatpush.bf16.msra.mxu3 %v2855_v21  ;;  %v2129_v21 = vor.u32 %v2381_v38, %v2128_v37  ;;  %v2185_v37 = vor.u32 %v2394_v34, %v2184_v33  ;;  %v2209_v33 = vor.u32 %v2400_v17, %v2208_v15 }
  0x83   : > { %2462 = vmatpush.bf16.msra.mxu3 %v2870_v24  ;;  %v2229_v24 = vor.u32 %v2404_v40, %v2226_v41 }
  0x85   : > { %1797 = vperm.xlu2 %2510, %v1105_v12  }
  0x87   : > { %2463 = vmatpush.bf16.msra.mxu3 %v2883_v27  ;;  %v2407_v27 = vld [vmem:[%s2748_s14 + $0x13c] sm:$0xf] }
  0x88   : > { %v2241_v57 = vor.u32 %v2407_v27, %v2238_v52 }
  0x8a   : > { %839 = vmatmul.bf16.gmra.mxu0 %v2129_v21  ;;  %968 = vmatmul.bf16.vlgmr.msrb.gmra.mxu3 %v2229_v24  ;;  %v2196_v24 = vld [vmem:[%s2748_s14 + $0xe0] sm:$0xf] }
  0x8b   : > { %928 = vmatmul.bf16.gmra.mxu1 %v2133_v45  ;;  %v2244_v45 = vld [vmem:[%s2748_s14 + $0x140] sm:$0xf] }
  0x8c   : > { %1017 = vmatmul.bf16.gmra.mxu2 %v2137_v46  ;;  %v2409_v46 = vld [vmem:[%s2748_s14 + $0x148] sm:$0xf0] }
  0x8d   : > { %v2245_v54 = vor.u32 %v2409_v46, %v2244_v45 }
  0x9a   : > { %844 = vmatmul.bf16.gmra.mxu0 %v2141_v56  ;;  %973 = vmatmul.bf16.gmra.mxu3 %v2241_v57 }
  0x9b   : > { %933 = vmatmul.bf16.gmra.mxu1 %v2145_v58  ;;  %v2197_v58 = vor.u32 %v2397_v49, %v2196_v24  ;;  %v2220_v49 = vld [vmem:[%s2748_s14 + $0x110] sm:$0xf] }
  0x9c   : > { %1022 = vmatmul.bf16.gmra.mxu2 %v2149_v59  ;;  %v2193_v59 = vor.u32 %v2395_v50, %v2190_v51  ;;  %v2403_v50 = vld [vmem:[%s2748_s14 + $0x118] sm:$0xf0]  ;;  %v2268_v51 = vld [vmem:[%s2748_s14 + $0x170] sm:$0xf] }
  0xa3   : > { %v3049_v24 = vpop.permute.xlu0 %1667 }
  0xaa   : > { %849 = vmatmul.bf16.gmra.mxu0 %v2153_v7  ;;  %978 = vmatmul.bf16.gmra.mxu3 %v2253_v8 }
  0xab   : > { %938 = vmatmul.bf16.gmra.mxu1 %v2157_v10 }
  0xac   : > { %1027 = vmatmul.bf16.gmra.mxu2 %v2161_v11 }
  0xba   : > { %854 = vmatmul.bf16.gmra.mxu0 %v2165_v23  ;;  %983 = vmatmul.bf16.gmra.mxu3 %v2265_v25  ;;  %v2398_v23 = vld [vmem:[%s2748_s14 + $0xf4] sm:$0xf]  ;;  %v2202_v25 = vld [vmem:[%s2748_s14 + $0xfc] sm:$0xf0] }
  0xbb   : > { %943 = vmatmul.bf16.gmra.mxu1 %v2169_v26  ;;  %v2205_v34 = vor.u32 %v2398_v23, %v2202_v25 }
  0xbc   : > { %1032 = vmatmul.bf16.gmra.mxu2 %v2173_v28 }
  0xc7   : > { %v820_v16 = vpop.f32.mrf.mxu0 }
  0xc8   : > { %v909_v38 = vpop.f32.mrf.mxu1 }
  0xc9   : > { %v910_v39 = vadd.f32 %v909_v38, %v820_v16 }
  0xca   : > { %859 = vmatmul.bf16.gmra.mxu0 %v2177_v13  ;;  %1057 = vmatmul.bf16.vlgmr.msra.gmra.mxu3 %v2233_v35 }
  0xcb   : > { %948 = vmatmul.bf16.gmra.mxu1 %v2181_v36 }
  0xcc   : > { %1037 = vmatmul.bf16.gmra.mxu2 %v2185_v37 }
  0xcd   : > { %v3003_v40 = vpop.f32.mrf.mxu3 }
  0xcf   : > { %v998_v41 = vpop.f32.mrf.mxu2  ;;  %v822_v43 = vpop.f32.mrf.mxu0 }
  0xd0   : > { %v3005_v42 = vadd.f32 %v998_v41, %v910_v39  ;;  %v911_v44 = vpop.f32.mrf.mxu1 }
  0xd1   : > { %v912_v27 = vadd.f32 %v911_v44, %v822_v43 }
  0xd2   : > { %vm1113_vm0 = vcmp.gt.f32.partialorder %v3005_v42, 0.0 }
  0xd3   : > { %v1145_v21 = vsel %vm1113_vm0, %v3005_v42, 1.0 }
  0xd4   : > { %2516 = vrcp.f32 %v1145_v21 }
  0xd5   : > { %v3017_v52 = vpop.f32.mrf.mxu3 }
  0xd7   : > { %v1000_v53 = vpop.f32.mrf.mxu2  ;;  %v825_v57 = vpop.f32.mrf.mxu0 }
  0xd8   : > { %v3019_v56 = vadd.f32 %v1000_v53, %v912_v27  ;;  %v914_v60 = vpop.f32.mrf.mxu1  ;;  %v2415_v27 = vld [vmem:[%s2748_s14 + $0x178] sm:$0xf0]  ;;  %v2212_v53 = vld [vmem:[%s2748_s14 + $0x108] sm:$0xf] }
  0xd9   : > { %v915_v0 = vadd.f32 %v914_v60, %v825_v57  ;;  %v2401_v57 = vld [vmem:[%s2748_s14 + $0x10c] sm:$0xf] }
  0xda   : > { %v2517_v61 = vpop.eup %2516  ;;  %vm1114_vm1 = vcmp.gt.f32.partialorder %v3019_v56, 0.0  ;;  %1062 = vmatmul.bf16.gmra.mxu3 %v2245_v54  ;;  %864 = vmatmul.bf16.gmra.mxu0 %v2189_v55  ;;  %v2402_v54 = vld [vmem:[%s2748_s14 + $0x110] sm:$0xf0] }
  0xdb   : > { %v1209_v62 = vmul.f32 %v2517_v61, %v1145_v21  ;;  %v1146_v63 = vsel %vm1114_vm1, %v3019_v56, 1.0  ;;  %953 = vmatmul.bf16.gmra.mxu1 %v2193_v59 }
  0xdc   : > { %2518 = vrcp.f32 %v1146_v63  ;;  %1042 = vmatmul.bf16.gmra.mxu2 %v2197_v58  ;;  %v2214_v58 = vld [vmem:[%s2748_s14 + $0x114] sm:$0xf0] }
  0xdd   : > { %v1241_v1 = vsub.f32 2.0, %v1209_v62  ;;  %v3023_v3 = vpop.f32.mrf.mxu3 }
  0xdf   : > { %v1003_v4 = vpop.f32.mrf.mxu2  ;;  %v1273_v6 = vmul.f32 %v2517_v61, %v1241_v1  ;;  %v827_v8 = vpop.f32.mrf.mxu0 }
  0xe0   : > { %v3025_v7 = vadd.f32 %v1003_v4, %v915_v0  ;;  %v916_v10 = vpop.f32.mrf.mxu1  ;;  %v2213_v0 = vor.u32 %v2402_v54, %v2212_v53 }
  0xe1   : > { %1337 = vrot.lane.b32.xlu0 %v1273_v6, %s2649_s16  ;;  %v917_v26 = vadd.f32 %v916_v10, %v827_v8  ;;  %v2221_v6 = vor.u32 %v2403_v50, %v2220_v49  ;;  %v2217_v8 = vor.u32 %v2401_v57, %v2214_v58 }
  0xe2   : > { %v2519_v11 = vpop.eup %2518  ;;  %vm1115_vm2 = vcmp.gt.f32.partialorder %v3025_v7, 0.0 }
  0xe3   : > { %v1210_v12 = vmul.f32 %v2519_v11, %v1146_v63  ;;  %v1147_v14 = vsel %vm1115_vm2, %v3025_v7, 1.0  ;;  %v2269_v63 = vor.u32 %v2415_v27, %v2268_v51 }
  0xe4   : > { %2520 = vrcp.f32 %v1147_v14 }
  0xe5   : > { %v1242_v22 = vsub.f32 2.0, %v1210_v12  ;;  %v3038_v28 = vpop.f32.mrf.mxu3  ;;  %v3068_v12 = vpop.permute.xlu0 %1682 }
  0xe7   : > { %v1005_v29 = vpop.f32.mrf.mxu2  ;;  %v1274_v30 = vmul.f32 %v2519_v11, %v1242_v22  ;;  %v830_v32 = vpop.f32.mrf.mxu0 }
  0xe8   : > { %v3040_v9 = vadd.f32 %v1005_v29, %v917_v26  ;;  %v919_v13 = vpop.f32.mrf.mxu1 }
  0xe9   : > { %1339 = vrot.lane.b32.xlu0 %v1274_v30, %s2649_s16  ;;  %v920_v37 = vadd.f32 %v919_v13, %v830_v32 }
  0xea   : > { %v2521_v35 = vpop.eup %2520  ;;  %vm1116_vm3 = vcmp.gt.f32.partialorder %v3040_v9, 0.0  ;;  %1067 = vmatmul.bf16.gmra.mxu3 %v2257_v31  ;;  %869 = vmatmul.bf16.gmra.mxu0 %v2201_v5 }
  0xeb   : > { %v1211_v16 = vmul.f32 %v2521_v35, %v1147_v14  ;;  %v1148_v36 = vsel %vm1116_vm3, %v3040_v9, 1.0  ;;  %958 = vmatmul.bf16.gmra.mxu1 %v2205_v34 }
  0xec   : > { %2522 = vrcp.f32 %v1148_v36  ;;  %1047 = vmatmul.bf16.gmra.mxu2 %v2209_v33 }
  0xed   : > { %v1243_v38 = vsub.f32 2.0, %v1211_v16  ;;  %v3045_v39 = vpop.f32.mrf.mxu3  ;;  %v3078_v31 = vpop.permute.xlu0 %1697 }
  0xef   : > { %v1008_v41 = vpop.f32.mrf.mxu2  ;;  %v1275_v43 = vmul.f32 %v2521_v35, %v1243_v38  ;;  %v832_v21 = vpop.f32.mrf.mxu0 }
  0xf0   : > { %v3047_v44 = vadd.f32 %v1008_v41, %v920_v37  ;;  %v921_v45 = vpop.f32.mrf.mxu1  ;;  %v3086_v38 = vpop.permute.xlu1 %1672 }
  0xf1   : > { %1341 = vrot.lane.b32.xlu1 %v1275_v43, %s2649_s16  ;;  %v922_v59 = vadd.f32 %v921_v45, %v832_v21 }
  0xf2   : > { %v2523_v46 = vpop.eup %2522  ;;  %vm1117_vm4 = vcmp.gt.f32.partialorder %v3047_v44, 0.0 }
  0xf3   : > { %v1212_v47 = vmul.f32 %v2523_v46, %v1148_v36  ;;  %v1149_v48 = vsel %vm1117_vm4, %v3047_v44, 1.0 }
  0xf4   : > { %2524 = vrcp.f32 %v1149_v48 }
  0xf5   : > { %v1244_v55 = vsub.f32 2.0, %v1212_v47  ;;  %v3062_v60 = vpop.f32.mrf.mxu3 }
  0xf7   : > { %v1010_v61 = vpop.f32.mrf.mxu2  ;;  %v1276_v62 = vmul.f32 %v2523_v46, %v1244_v55  ;;  %v835_v4 = vpop.f32.mrf.mxu0 }
  0xf8   : > { %v3064_v1 = vadd.f32 %v1010_v61, %v922_v59  ;;  %v924_v10 = vpop.f32.mrf.mxu1  ;;  %v3089_v46 = vpop.permute.xlu2 %1662 }
  0xf9   : > { %1343 = vrot.lane.b32.xlu1 %v1276_v62, %s2649_s16  ;;  %v925_v17 = vadd.f32 %v924_v10, %v835_v4  ;;  %v3101_v59 = vpop.permute.xlu1 %1687 }
  0xfa   : > { %v2525_v11 = vpop.eup %2524  ;;  %vm1118_vm5 = vcmp.gt.f32.partialorder %v3064_v1, 0.0  ;;  %1072 = vmatmul.bf16.gmra.mxu3 %v2269_v63  ;;  %874 = vmatmul.bf16.gmra.mxu0 %v2213_v0 }
  0xfb   : > { %v1213_v14 = vmul.f32 %v2525_v11, %v1149_v48  ;;  %v1150_v15 = vsel %vm1118_vm5, %v3064_v1, 1.0  ;;  %963 = vmatmul.bf16.gmra.mxu1 %v2217_v8  ;;  %v3091_v48 = vpop.permute.xlu0 %1712 }
  0xfc   : > { %2526 = vrcp.f32 %v1150_v15  ;;  %1052 = vmatmul.bf16.gmra.mxu2 %v2221_v6 }
  0xfd   : > { %v1245_v18 = vsub.f32 2.0, %v1213_v14  ;;  %v3071_v2 = vpop.f32.mrf.mxu3 }
  0xff   : > { %v1013_v19 = vpop.f32.mrf.mxu2  ;;  %v1277_v20 = vmul.f32 %v2525_v11, %v1245_v18  ;;  %v837_v23 = vpop.f32.mrf.mxu0 }
 0x100   : > { %v3073_v22 = vadd.f32 %v1013_v19, %v925_v17  ;;  %v926_v25 = vpop.f32.mrf.mxu1  ;;  %v3106_v6 = vpop.permute.xlu2 %1677 }
 0x101   : > { %1345 = vrot.lane.b32.xlu2 %v1277_v20, %s2649_s16  ;;  %v927_v32 = vadd.f32 %v926_v25, %v837_v23  ;;  %v3115_v23 = vpop.permute.xlu1 %1702 }
 0x102   : > { %v2527_v26 = vpop.eup %2526  ;;  %vm1119_vm6 = vcmp.gt.f32.partialorder %v3073_v22, 0.0 }
 0x103   : > { %v1214_v29 = vmul.f32 %v2527_v26, %v1150_v15  ;;  %v1151_v30 = vsel %vm1119_vm6, %v3073_v22, 1.0  ;;  %v3110_v11 = vpop.permute.xlu0 %1727 }
 0x104   : > { %2528 = vrcp.f32 %v1151_v30  ;;  %3564 = vst [vmem:[#allocation5_spill] sm:$0xff] %v3110_v11 }
 0x105   : > { %v1246_v5 = vsub.f32 2.0, %v1214_v29  ;;  %v3080_v33 = vpop.f32.mrf.mxu3 }
 0x107   : > { %v1015_v34 = vpop.f32.mrf.mxu2  ;;  %v1278_v13 = vmul.f32 %v2527_v26, %v1246_v5  ;;  %v840_v16 = vpop.f32.mrf.mxu0 }
 0x108   : > { %v3082_v35 = vadd.f32 %v1015_v34, %v927_v32  ;;  %v929_v36 = vpop.f32.mrf.mxu1 }
 0x109   : > { %1347 = vrot.lane.b32.xlu2 %v1278_v13, %s2649_s16  ;;  %v930_v21 = vadd.f32 %v929_v36, %v840_v16  ;;  %v3123_v13 = vpop.permute.xlu2 %1692 }
 0x10a   : > { %v2529_v37 = vpop.eup %2528  ;;  %vm1120_vm7 = vcmp.gt.f32.partialorder %v3082_v35, 0.0 }
 0x10b   : > { %v1215_v41 = vmul.f32 %v2529_v37, %v1151_v30  ;;  %v1152_v43 = vsel %vm1120_vm7, %v3082_v35, 1.0  ;;  %v3126_v16 = vpop.permute.xlu0 %1742 }
 0x10c   : > { %2530 = vrcp.f32 %v1152_v43  ;;  %3565 = vst [vmem:[#allocation6_spill] sm:$0xff] %v3126_v16 }
 0x10d   : > { %v1247_v45 = vsub.f32 2.0, %v1215_v41  ;;  %v969_v47 = vpop.f32.mrf.mxu3 }
 0x10e   : > { %v3094_v49 = vadd.f32 %v969_v47, %v3003_v40 }
 0x10f   : > { %v1018_v50 = vpop.f32.mrf.mxu2  ;;  %v1279_v51 = vmul.f32 %v2529_v37, %v1247_v45  ;;  %v842_v53 = vpop.f32.mrf.mxu0 }
 0x110   : > { %v3096_v27 = vadd.f32 %v1018_v50, %v930_v21  ;;  %v931_v54 = vpop.f32.mrf.mxu1 }
 0x111   : > { %1349 = vrot.lane.b32.xlu0 %v1279_v51, %s2649_s16  ;;  %v932_v40 = vadd.f32 %v931_v54, %v842_v53  ;;  %v3133_v51 = vpop.permute.xlu1 %1717 }
 0x112   : > { %v2531_v55 = vpop.eup %2530  ;;  %vm1121_vm8 = vcmp.gt.f32.partialorder %v3096_v27, 0.0 }
 0x113   : > { %v1216_v57 = vmul.f32 %v2531_v55, %v1152_v43  ;;  %v1153_v58 = vsel %vm1121_vm8, %v3096_v27, 1.0 }
 0x114   : > { %2532 = vrcp.f32 %v1153_v58 }
 0x115   : > { %v1248_v61 = vsub.f32 2.0, %v1216_v57  ;;  %v971_v62 = vpop.f32.mrf.mxu3 }
 0x116   : > { %v3104_v63 = vadd.f32 %v971_v62, %v3017_v52 }
 0x117   : > { %v1020_v0 = vpop.f32.mrf.mxu2  ;;  %v1280_v4 = vmul.f32 %v2531_v55, %v1248_v61  ;;  %v845_v10 = vpop.f32.mrf.mxu0 }
 0x118   : > { %v3108_v8 = vadd.f32 %v1020_v0, %v932_v40  ;;  %v934_v14 = vpop.f32.mrf.mxu1  ;;  %v3140_v40 = vpop.permute.xlu0 %1757 }
 0x119   : > { %1351 = vrot.lane.b32.xlu1 %v1280_v4, %s2649_s16  ;;  %v935_v52 = vadd.f32 %v934_v14, %v845_v10  ;;  %3566 = vst [vmem:[#allocation7_spill] sm:$0xff] %v3140_v40 }
 0x11a   : > { %v2533_v15 = vpop.eup %2532  ;;  %vm1122_vm9 = vcmp.gt.f32.partialorder %v3108_v8, 0.0 }
 0x11b   : > { %v1217_v17 = vmul.f32 %v2533_v15, %v1153_v58  ;;  %v1154_v18 = vsel %vm1122_vm9, %v3108_v8, 1.0  ;;  %v3138_v58 = vpop.permute.xlu2 %1707 }
 0x11c   : > { %2534 = vrcp.f32 %v1154_v18 }
 0x11d   : > { %v1249_v19 = vsub.f32 2.0, %v1217_v17  ;;  %v974_v20 = vpop.f32.mrf.mxu3 }
 0x11e   : > { %v3118_v25 = vadd.f32 %v974_v20, %v3023_v3 }
 0x11f   : > { %v1023_v26 = vpop.f32.mrf.mxu2  ;;  %v1281_v29 = vmul.f32 %v2533_v15, %v1249_v19  ;;  %v847_v5 = vpop.f32.mrf.mxu0 }
 0x120   : > { %v3120_v30 = vadd.f32 %v1023_v26, %v935_v52  ;;  %v936_v32 = vpop.f32.mrf.mxu1  ;;  %v3149_v19 = vpop.permute.xlu1 %1732 }
 0x121   : > { %1353 = vrot.lane.b32.xlu2 %v1281_v29, %s2649_s16  ;;  %v937_v41 = vadd.f32 %v936_v32, %v847_v5 }
 0x122   : > { %v2535_v34 = vpop.eup %2534  ;;  %vm1123_vm10 = vcmp.gt.f32.partialorder %v3120_v30, 0.0 }
 0x123   : > { %v1218_v36 = vmul.f32 %v2535_v34, %v1154_v18  ;;  %v1155_v37 = vsel %vm1123_vm10, %v3120_v30, 1.0 }
 0x124   : > { %2536 = vrcp.f32 %v1155_v37 }
 0x125   : > { %v1250_v3 = vsub.f32 2.0, %v1218_v36  ;;  %v3129_v43 = vpop.f32.mrf.mxu3 }
 0x127   : > { %v1025_v21 = vpop.f32.mrf.mxu2  ;;  %v1282_v45 = vmul.f32 %v2535_v34, %v1250_v3  ;;  %v850_v50 = vpop.f32.mrf.mxu0 }
 0x128   : > { %v3131_v47 = vadd.f32 %v1025_v21, %v937_v41  ;;  %v939_v53 = vpop.f32.mrf.mxu1  ;;  %v3154_v34 = vpop.permute.xlu0 %1772 }
 0x129   : > { %1355 = vrot.lane.b32.xlu0 %v1282_v45, %s2649_s16  ;;  %v940_v61 = vadd.f32 %v939_v53, %v850_v50  ;;  %3568 = vst [vmem:[#allocation9_spill] sm:$0xff] %v3154_v34 }
 0x12a   : > { %v2537_v54 = vpop.eup %2536  ;;  %vm1124_vm11 = vcmp.gt.f32.partialorder %v3131_v47, 0.0 }
 0x12b   : > { %v1219_v55 = vmul.f32 %v2537_v54, %v1155_v37  ;;  %v1156_v57 = vsel %vm1124_vm11, %v3131_v47, 1.0 }
 0x12c   : > { %2538 = vrcp.f32 %v1156_v57 }
 0x12d   : > { %v1251_v62 = vsub.f32 2.0, %v1219_v55  ;;  %v979_v0 = vpop.f32.mrf.mxu3 }
 0x12e   : > { %v3143_v4 = vadd.f32 %v979_v0, %v3045_v39  ;;  %v3152_v39 = vpop.permute.xlu2 %1722 }
 0x12f   : > { %v1028_v10 = vpop.f32.mrf.mxu2  ;;  %v1283_v14 = vmul.f32 %v2537_v54, %v1251_v62  ;;  %v852_v17 = vpop.f32.mrf.mxu0  ;;  %3567 = vst [vmem:[#allocation8_spill] sm:$0xff] %v3152_v39 }
 0x130   : > { %v3145_v15 = vadd.f32 %v1028_v10, %v940_v61  ;;  %v941_v18 = vpop.f32.mrf.mxu1 }
 0x131   : > { %1357 = vrot.lane.b32.xlu1 %v1283_v14, %s2649_s16  ;;  %v942_v5 = vadd.f32 %v941_v18, %v852_v17 }
 0x132   : > { %v2539_v52 = vpop.eup %2538  ;;  %vm1125_vm12 = vcmp.gt.f32.partialorder %v3145_v15, 0.0 }
 0x133   : > { %v1220_v20 = vmul.f32 %v2539_v52, %v1156_v57  ;;  %v1157_v26 = vsel %vm1125_vm12, %v3145_v15, 1.0  ;;  %v3164_v57 = vpop.permute.xlu1 %1747 }
 0x134   : > { %2540 = vrcp.f32 %v1157_v26  ;;  %3569 = vst [vmem:[#allocation10_spill] sm:$0xff] %v3164_v57 }
 0x135   : > { %v1252_v29 = vsub.f32 2.0, %v1220_v20  ;;  %v981_v32 = vpop.f32.mrf.mxu3 }
 0x136   : > { %v3157_v36 = vadd.f32 %v981_v32, %v3062_v60  ;;  %v3169_v14 = vpop.permute.xlu2 %1737 }
 0x137   : > { %v1030_v37 = vpop.f32.mrf.mxu2  ;;  %v1284_v3 = vmul.f32 %v2539_v52, %v1252_v29  ;;  %v855_v21 = vpop.f32.mrf.mxu0  ;;  %3570 = vst [vmem:[#allocation11_spill] sm:$0xff] %v3169_v14 }
 0x138   : > { %v3159_v41 = vadd.f32 %v1030_v37, %v942_v5  ;;  %v944_v45 = vpop.f32.mrf.mxu1  ;;  %v3173_v52 = vpop.permute.xlu0 %1787 }
 0x139   : > { %1359 = vrot.lane.b32.xlu2 %v1284_v3, %s2649_s16  ;;  %v945_v55 = vadd.f32 %v944_v45, %v855_v21  ;;  %3571 = vst [vmem:[#allocation12_spill] sm:$0xff] %v3173_v52 }
 0x13a   : > { %v2541_v50 = vpop.eup %2540  ;;  %vm1126_vm13 = vcmp.gt.f32.partialorder %v3159_v41, 0.0 }
 0x13b   : > { %v1221_v53 = vmul.f32 %v2541_v50, %v1157_v26  ;;  %v1158_v54 = vsel %vm1126_vm13, %v3159_v41, 1.0  ;;  %v3178_v3 = vpop.permute.xlu1 %1762 }
 0x13c   : > { %2542 = vrcp.f32 %v1158_v54  ;;  %3572 = vst [vmem:[#allocation13_spill] sm:$0xff] %v3178_v3 }
 0x13d   : > { %v1253_v60 = vsub.f32 2.0, %v1221_v53  ;;  %v984_v61 = vpop.f32.mrf.mxu3 }
 0x13e   : > { %v3167_v62 = vadd.f32 %v984_v61, %v3071_v2  ;;  %v3187_v61 = vpop.permute.xlu2 %1752 }
 0x13f   : > { %v1033_v0 = vpop.f32.mrf.mxu2  ;;  %v1285_v10 = vmul.f32 %v2541_v50, %v1253_v60  ;;  %v857_v18 = vpop.f32.mrf.mxu0  ;;  %3573 = vst [vmem:[#allocation14_spill] sm:$0xff] %v3187_v61 }
 0x140   : > { %v3171_v17 = vadd.f32 %v1033_v0, %v945_v55  ;;  %v946_v20 = vpop.f32.mrf.mxu1  ;;  %v3189_v0 = vpop.permute.xlu0 %1802 }
 0x141   : > { %1361 = vrot.lane.b32.xlu0 %v1285_v10, %s2649_s16  ;;  %v947_v32 = vadd.f32 %v946_v20, %v857_v18  ;;  %3574 = vst [vmem:[#allocation15_spill] sm:$0xff] %v3189_v0 }
 0x142   : > { %v2543_v26 = vpop.eup %2542  ;;  %vm1127_vm14 = vcmp.gt.f32.partialorder %v3171_v17, 0.0 }
 0x143   : > { %v1222_v29 = vmul.f32 %v2543_v26, %v1158_v54  ;;  %v1159_v5 = vsel %vm1127_vm14, %v3171_v17, 1.0 }
 0x144   : > { %2544 = vrcp.f32 %v1159_v5 }
 0x145   : > { %v1254_v2 = vsub.f32 2.0, %v1222_v29  ;;  %v986_v37 = vpop.f32.mrf.mxu3 }
 0x146   : > { %v3181_v21 = vadd.f32 %v986_v37, %v3080_v33 }
 0x147   : > { %v1035_v45 = vpop.f32.mrf.mxu2  ;;  %v1286_v50 = vmul.f32 %v2543_v26, %v1254_v2  ;;  %v860_v55 = vpop.f32.mrf.mxu0 }
 0x148   : > { %v3183_v53 = vadd.f32 %v1035_v45, %v947_v32  ;;  %v949_v60 = vpop.f32.mrf.mxu1 }
 0x149   : > { %1363 = vrot.lane.b32.xlu1 %v1286_v50, %s2649_s16  ;;  %v950_v33 = vadd.f32 %v949_v60, %v860_v55  ;;  %v3197_v50 = vpop.permute.xlu1 %1777 }
 0x14a   : > { %v2545_v54 = vpop.eup %2544  ;;  %vm1128_vm15 = vcmp.gt.f32.partialorder %v3183_v53, 0.0  ;;  %3575 = vst [vmem:[#allocation16_spill] sm:$0xff] %v3197_v50 }
 0x14b   : > { %v1223_v10 = vmul.f32 %v2545_v54, %v1159_v5  ;;  %v1160_v18 = vsel %vm1128_vm15, %v3183_v53, 1.0 }
 0x14c   : > { %2546 = vrcp.f32 %v1160_v18 }
 0x14d   : > { %v1255_v20 = vsub.f32 2.0, %v1223_v10  ;;  %v1058_v26 = vpop.f32.mrf.mxu3 }
 0x14e   : > { %v3193_v2 = vadd.f32 %v1058_v26, %v3094_v49 }
 0x14f   : > { %v1038_v29 = vpop.f32.mrf.mxu2  ;;  %v1287_v32 = vmul.f32 %v2545_v54, %v1255_v20  ;;  %v862_v45 = vpop.f32.mrf.mxu0 }
 0x150   : > { %v3195_v37 = vadd.f32 %v1038_v29, %v950_v33  ;;  %vm1137_vm0 = vcmp.gt.f32.partialorder %v3193_v2, 0.0  ;;  %v951_v34 = vpop.f32.mrf.mxu1  ;;  %v3204_v54 = vpop.permute.xlu2 %1767 }
 0x151   : > { %1365 = vrot.lane.b32.xlu2 %v1287_v32, %s2649_s16  ;;  %v1169_v49 = vsel %vm1137_vm0, %v3193_v2, 1.0  ;;  %3576 = vst [vmem:[#allocation17_spill] sm:$0xff] %v3204_v54  ;;  %v952_v20 = vadd.f32 %v951_v34, %v862_v45  ;;  %vm1954_vm0 = vcmask 130048  }
 0x152   : > { %v2547_v5 = vpop.eup %2546  ;;  %vm1129_vm1 = vcmp.gt.f32.partialorder %v3195_v37, 0.0 }
 0x153   : > { %v1224_v55 = vmul.f32 %v2547_v5, %v1160_v18  ;;  %v1161_v60 = vsel %vm1129_vm1, %v3195_v37, 1.0  ;;  %v1338_v10 = vpop.permute.xlu0 %1337 }
 0x154   : > { %2548 = vrcp.f32 %v1161_v60  ;;  %v1433_v29 = vmul.f32 %v1338_v10, %v3005_v42  ;;  %v3216_v42 = vpop.permute.xlu1 %1792 }
 0x155   : > { %v1256_v33 = vsub.f32 2.0, %v1224_v55  ;;  %v1060_v26 = vpop.f32.mrf.mxu3  ;;  %2550 = vrcp.f32 %v1169_v49  ;;  %3577 = vst [vmem:[#allocation18_spill] sm:$0xff] %v3216_v42 }
 0x156   : > { %v3208_v32 = vadd.f32 %v1060_v26, %v3104_v63 }
 0x157   : > { %v1040_v0 = vpop.f32.mrf.mxu2  ;;  %v1288_v40 = vmul.f32 %v2547_v5, %v1256_v33  ;;  %v865_v61 = vpop.f32.mrf.mxu0 }
 0x158   : > { %v3210_v18 = vadd.f32 %v1040_v0, %v952_v20  ;;  %vm1138_vm2 = vcmp.gt.f32.partialorder %v3208_v32, 0.0  ;;  %v954_v54 = vpop.f32.mrf.mxu1 }
 0x159   : > { %1367 = vrot.lane.b32.xlu0 %v1288_v40, %s2649_s16  ;;  %1467 = vperm.xlu2 %2510, %v1433_v29   ;;  %v1170_v34 = vsel %vm1138_vm2, %v3208_v32, 1.0  ;;  %v955_v5 = vadd.f32 %v954_v54, %v865_v61  ;;  %v3219_v40 = vpop.permute.xlu2 %1782 }
 0x15a   : > { %v2549_v55 = vpop.eup %2548  ;;  %vm1130_vm3 = vcmp.gt.f32.partialorder %v3210_v18, 0.0  ;;  %3578 = vst [vmem:[#allocation19_spill] sm:$0xff] %v3219_v40 }
 0x15b   : > { %v1225_v45 = vmul.f32 %v2549_v55, %v1161_v60  ;;  %v1162_v63 = vsel %vm1130_vm3, %v3210_v18, 1.0  ;;  %v1340_v0 = vpop.permute.xlu0 %1339  ;;  %v2551_v10 = vpop.eup %2550 }
 0x15c   : > { %2552 = vrcp.f32 %v1162_v63  ;;  %v1434_v26 = vmul.f32 %v1340_v0, %v3019_v56  ;;  %v1233_v16 = vmul.f32 %v2551_v10, %v1169_v49 }
 0x15d   : > { %2554 = vrcp.f32 %v1170_v34  ;;  %v1257_v33 = vsub.f32 2.0, %v1225_v45  ;;  %v1063_v20 = vpop.f32.mrf.mxu3 }
 0x15e   : > { %v3223_v50 = vadd.f32 %v1063_v20, %v3118_v25 }
 0x15f   : > { %v1043_v29 = vpop.f32.mrf.mxu2  ;;  %v1289_v52 = vmul.f32 %v2549_v55, %v1257_v33  ;;  %v867_v3 = vpop.f32.mrf.mxu0  ;;  %v977_v33 = vadd.f32 %v3129_v43, %v3038_v28 }
 0x160   : > { %v3225_v60 = vadd.f32 %v1043_v29, %v955_v5  ;;  %vm1139_vm4 = vcmp.gt.f32.partialorder %v3223_v50, 0.0  ;;  %v956_v61 = vpop.f32.mrf.mxu1  ;;  %v1265_v5 = vsub.f32 2.0, %v1233_v16 }
 0x161   : > { %1369 = vrot.lane.b32.xlu1 %v1289_v52, %s2649_s16  ;;  %1472 = vperm.xlu0 %2511, %v1434_v26   ;;  %v1171_v25 = vsel %vm1139_vm4, %v3223_v50, 1.0  ;;  %v957_v49 = vadd.f32 %v956_v61, %v867_v3  ;;  %v3239_v57 = vpop.permute.xlu2 %1797 }
 0x162   : > { %v2553_v54 = vpop.eup %2552  ;;  %vm1131_vm5 = vcmp.gt.f32.partialorder %v3225_v60, 0.0  ;;  %v1297_v11 = vmul.f32 %v2551_v10, %v1265_v5  ;;  %3579 = vst [vmem:[#allocation20_spill] sm:$0xff] %v3239_v57 }
 0x163   : > { %v2555_v45 = vpop.eup %2554  ;;  %v1226_v56 = vmul.f32 %v2553_v54, %v1162_v63  ;;  %v1163_v0 = vsel %vm1131_vm5, %v3225_v60, 1.0  ;;  %v1342_v55 = vpop.permute.xlu1 %1341 }
 0x164   : > { %2556 = vrcp.f32 %v1163_v0  ;;  %v1234_v52 = vmul.f32 %v2555_v45, %v1170_v34  ;;  %v1435_v29 = vmul.f32 %v1342_v55, %v3025_v7 }
 0x165   : > { %v1258_v20 = vsub.f32 2.0, %v1226_v56  ;;  %2558 = vrcp.f32 %v1171_v25  ;;  %v1065_v26 = vpop.f32.mrf.mxu3 }
 0x166   : > { %v3235_v14 = vadd.f32 %v1065_v26, %v977_v33  ;;  %v1266_v43 = vsub.f32 2.0, %v1234_v52 }
 0x167   : > { %v1045_v40 = vpop.f32.mrf.mxu2  ;;  %v1290_v63 = vmul.f32 %v2553_v54, %v1258_v20  ;;  %v870_v39 = vpop.f32.mrf.mxu0 }
 0x168   : > { %v3237_v42 = vadd.f32 %v1045_v40, %v957_v49  ;;  %vm1140_vm6 = vcmp.gt.f32.partialorder %v3235_v14, 0.0  ;;  %v959_v28 = vpop.f32.mrf.mxu1  ;;  %v1298_v55 = vmul.f32 %v2555_v45, %v1266_v43 }
 0x169   : > { %1477 = vperm.xlu1 %2512, %v1435_v29   ;;  %1371 = vrot.lane.b32.xlu2 %v1290_v63, %s2649_s16  ;;  %v1172_v7 = vsel %vm1140_vm6, %v3235_v14, 1.0  ;;  %v960_v61 = vadd.f32 %v959_v28, %v870_v39  ;;  %v1346_v29 = vpop.permute.xlu2 %1345 }
 0x16a   : > { %v2557_v16 = vpop.eup %2556  ;;  %vm1132_vm7 = vcmp.gt.f32.partialorder %v3237_v42, 0.0  ;;  %1385 = vrot.lane.b32.xlu0 %v1297_v11, %s2649_s16  ;;  %2560 = vrcp.f32 %v1172_v7 }
 0x16b   : > { %v1227_v3 = vmul.f32 %v2557_v16, %v1163_v0  ;;  %v1164_v34 = vsel %vm1132_vm7, %v3237_v42, 1.0  ;;  %v2559_v10 = vpop.eup %2558  ;;  %v1344_v40 = vpop.permute.xlu1 %1343 }
 0x16c   : > { %2562 = vrcp.f32 %v1164_v34  ;;  %v1235_v49 = vmul.f32 %v2559_v10, %v1171_v25  ;;  %v1436_v5 = vmul.f32 %v1344_v40, %v3040_v9  ;;  %v1437_v40 = vmul.f32 %v1346_v29, %v3047_v44 }
 0x16d   : > { %v1259_v54 = vsub.f32 2.0, %v1227_v3  ;;  %v1068_v56 = vpop.f32.mrf.mxu3 }
 0x16e   : > { %v3249_v20 = vadd.f32 %v1068_v56, %v3143_v4  ;;  %v1267_v25 = vsub.f32 2.0, %v1235_v49 }
 0x16f   : > { %v1048_v33 = vpop.f32.mrf.mxu2  ;;  %v1291_v11 = vmul.f32 %v2557_v16, %v1259_v54  ;;  %v872_v0 = vpop.f32.mrf.mxu0 }
 0x170   : > { %v3251_v52 = vadd.f32 %v1048_v33, %v960_v61  ;;  %v2561_v26 = vpop.eup %2560  ;;  %vm1141_vm8 = vcmp.gt.f32.partialorder %v3249_v20, 0.0  ;;  %v961_v39 = vpop.f32.mrf.mxu1  ;;  %v1299_v56 = vmul.f32 %v2559_v10, %v1267_v25 }
 0x171   : > { %1387 = vrot.lane.b32.xlu1 %v1298_v55, %s2649_s16  ;;  %1482 = vperm.xlu2 %2510, %v1436_v5   ;;  %v1236_v45 = vmul.f32 %v2561_v26, %v1172_v7  ;;  %v1173_v9 = vsel %vm1141_vm8, %v3249_v20, 1.0  ;;  %v962_v28 = vadd.f32 %v961_v39, %v872_v0 }
 0x172   : > { %vm1133_vm9 = vcmp.gt.f32.partialorder %v3251_v52, 0.0  ;;  %1373 = vrot.lane.b32.xlu0 %v1291_v11, %s2649_s16  ;;  %v2563_v63 = vpop.eup %2562  ;;  %2564 = vrcp.f32 %v1173_v9 }
 0x173   : > { %v1165_v4 = vsel %vm1133_vm9, %v3251_v52, 1.0  ;;  %v1268_v16 = vsub.f32 2.0, %v1236_v45  ;;  %v1228_v61 = vmul.f32 %v2563_v63, %v1164_v34  ;;  %v1348_v34 = vpop.permute.xlu2 %1347 }
 0x174   : > { %2566 = vrcp.f32 %v1165_v4 }
 0x175   : > { %v1070_v43 = vpop.f32.mrf.mxu3  ;;  %v1300_v3 = vmul.f32 %v2561_v26, %v1268_v16  ;;  %v1260_v10 = vsub.f32 2.0, %v1228_v61  ;;  %v1438_v26 = vmul.f32 %v1348_v34, %v3064_v1 }
 0x176   : > { %v3261_v54 = vadd.f32 %v1070_v43, %v3157_v36 }
 0x177   : > { %v1050_v7 = vpop.f32.mrf.mxu2  ;;  %v875_v5 = vpop.f32.mrf.mxu0  ;;  %v1292_v16 = vmul.f32 %v2563_v63, %v1260_v10 }
 0x178   : > { %v3263_v55 = vadd.f32 %v1050_v7, %v962_v28  ;;  %vm1142_vm10 = vcmp.gt.f32.partialorder %v3261_v54, 0.0  ;;  %v964_v49 = vpop.f32.mrf.mxu1  ;;  %v2565_v44 = vpop.eup %2564 }
 0x179   : > { %1487 = vperm.xlu1 %2512, %v1437_v40   ;;  %1389 = vrot.lane.b32.xlu2 %v1299_v56, %s2649_s16  ;;  %v1174_v36 = vsel %vm1142_vm10, %v3261_v54, 1.0  ;;  %v965_v0 = vadd.f32 %v964_v49, %v875_v5  ;;  %v1237_v45 = vmul.f32 %v2565_v44, %v1173_v9 }
 0x17a   : > { %vm1134_vm11 = vcmp.gt.f32.partialorder %v3263_v55, 0.0  ;;  %1391 = vrot.lane.b32.xlu0 %v1300_v3, %s2649_s16  ;;  %v2567_v11 = vpop.eup %2566 }
 0x17b   : > { %v1166_v33 = vsel %vm1134_vm11, %v3263_v55, 1.0  ;;  %v1229_v39 = vmul.f32 %v2567_v11, %v1165_v4  ;;  %v1269_v4 = vsub.f32 2.0, %v1237_v45 }
 0x17c   : > { %2568 = vrcp.f32 %v1166_v33 }
 0x17d   : > { %2570 = vrcp.f32 %v1174_v36  ;;  %v1073_v29 = vpop.f32.mrf.mxu3  ;;  %v1261_v63 = vsub.f32 2.0, %v1229_v39 }
 0x17e   : > { %v3273_v28 = vadd.f32 %v1073_v29, %v3167_v62  ;;  %v1301_v29 = vmul.f32 %v2565_v44, %v1269_v4 }
 0x17f   : > { %v1053_v25 = vpop.f32.mrf.mxu2  ;;  %v877_v3 = vpop.f32.mrf.mxu0 }
 0x180   : > { %v3275_v43 = vadd.f32 %v1053_v25, %v965_v0  ;;  %vm1143_vm12 = vcmp.gt.f32.partialorder %v3273_v28, 0.0  ;;  %v966_v40 = vpop.f32.mrf.mxu1  ;;  %v1293_v25 = vmul.f32 %v2567_v11, %v1261_v63 }
 0x181   : > { %1375 = vrot.lane.b32.xlu1 %v1292_v16, %s2649_s16  ;;  %1492 = vperm.xlu2 %2510, %v1438_v26   ;;  %v1175_v1 = vsel %vm1143_vm12, %v3273_v28, 1.0  ;;  %v967_v49 = vadd.f32 %v966_v40, %v877_v3 }
 0x182   : > { %v2569_v61 = vpop.eup %2568  ;;  %vm1135_vm13 = vcmp.gt.f32.partialorder %v3275_v43, 0.0  ;;  %2572 = vrcp.f32 %v1175_v1 }
 0x183   : > { %v1167_v9 = vsel %vm1135_vm13, %v3275_v43, 1.0  ;;  %v1350_v62 = vpop.permute.xlu0 %1349  ;;  %v2571_v7 = vpop.eup %2570  ;;  %v1230_v56 = vmul.f32 %v2569_v61, %v1166_v33 }
 0x184   : > { %v1439_v5 = vmul.f32 %v1350_v62, %v3073_v22  ;;  %2574 = vrcp.f32 %v1167_v9  ;;  %v1238_v10 = vmul.f32 %v2571_v7, %v1174_v36 }
 0x185   : > { %v1075_v34 = vpop.f32.mrf.mxu3  ;;  %v1262_v57 = vsub.f32 2.0, %v1230_v56 }
 0x186   : > { %1497 = vperm.xlu0 %2511, %v1439_v5   ;;  %v3284_v26 = vadd.f32 %v1075_v34, %v3181_v21  ;;  %v1270_v21 = vsub.f32 2.0, %v1238_v10 }
 0x187   : > { %v1055_v0 = vpop.f32.mrf.mxu2  ;;  %v1294_v39 = vmul.f32 %v2569_v61, %v1262_v57 }
 0x188   : > { %v3286_v16 = vadd.f32 %v1055_v0, %v967_v49  ;;  %v2573_v45 = vpop.eup %2572  ;;  %vm1144_vm14 = vcmp.gt.f32.partialorder %v3284_v26, 0.0  ;;  %v1302_v62 = vmul.f32 %v2571_v7, %v1270_v21  ;;  %v1354_v49 = vpop.permute.xlu2 %1353 }
 0x189   : > { %1393 = vrot.lane.b32.xlu1 %v1301_v29, %s2649_s16  ;;  %1377 = vrot.lane.b32.xlu2 %v1293_v25, %s2649_s16  ;;  %v1176_v22 = vsel %vm1144_vm14, %v3284_v26, 1.0  ;;  %v1239_v44 = vmul.f32 %v2573_v45, %v1175_v1  ;;  %v1441_v57 = vmul.f32 %v1354_v49, %v3096_v27 }
 0x18a   : > { %vm1136_vm15 = vcmp.gt.f32.partialorder %v3286_v16, 0.0  ;;  %v2575_v36 = vpop.eup %2574  ;;  %2576 = vrcp.f32 %v1176_v22 }
 0x18b   : > { %v1168_v33 = vsel %vm1136_vm15, %v3286_v16, 1.0  ;;  %v1352_v11 = vpop.permute.xlu1 %1351  ;;  %v1231_v3 = vmul.f32 %v2575_v36, %v1167_v9  ;;  %v1271_v4 = vsub.f32 2.0, %v1239_v44  ;;  %v3314_v44 = vld [vmem:[%s3559_s4] ss:$0 sm:$0xff] }
 0x18c   : > { %2578 = vrcp.f32 %v1168_v33  ;;  %v1440_v40 = vmul.f32 %v1352_v11, %v3082_v35 }
 0x18d   : > { %v1263_v56 = vsub.f32 2.0, %v1231_v3  ;;  %v1303_v34 = vmul.f32 %v2573_v45, %v1271_v4 }
 0x18e   : > { %1379 = vrot.lane.b32.xlu0 %v1294_v39, %s2649_s16 }
 0x18f   : > { %v1295_v10 = vmul.f32 %v2575_v36, %v1263_v56 }
 0x190   : > { %v2577_v63 = vpop.eup %2576 }
 0x191   : > { %1502 = vperm.xlu1 %2512, %v1440_v40   ;;  %1395 = vrot.lane.b32.xlu2 %v1302_v62, %s2649_s16  ;;  %v1240_v1 = vmul.f32 %v2577_v63, %v1176_v22 }
 0x192   : > { %v2579_v5 = vpop.eup %2578 }
 0x193   : > { %v1232_v61 = vmul.f32 %v2579_v5, %v1168_v33  ;;  %v1272_v9 = vsub.f32 2.0, %v1240_v1  ;;  %v1360_v45 = vpop.permute.xlu2 %1359 }
 0x194   : > { %v1444_v22 = vmul.f32 %v1360_v45, %v3131_v47 }
 0x195   : > { %v1264_v7 = vsub.f32 2.0, %v1232_v61  ;;  %v1304_v29 = vmul.f32 %v2577_v63, %v1272_v9 }
 0x196   : > { %1397 = vrot.lane.b32.xlu0 %v1303_v34, %s2649_s16  ;;  %v1826_v34 = vmul.f32 %v3314_v44, %v3106_v6  ;;  %v1824_v6 = vmul.f32 %v3314_v44, %v3049_v24 }
 0x197   : > { %v1296_v25 = vmul.f32 %v2579_v5, %v1264_v7 }
 0x199   : > { %1381 = vrot.lane.b32.xlu1 %v1295_v10, %s2649_s16  ;;  %1507 = vperm.xlu2 %2510, %v1441_v57  }
 0x19b   : > { %v1356_v35 = vpop.permute.xlu0 %1355 }
 0x19c   : > { %v1442_v0 = vmul.f32 %v1356_v35, %v3108_v8  ;;  %v3309_v8 = vld [vmem:[%s3558_s3] ss:$0 sm:$0xff] }
 0x19e   : > { %1512 = vperm.xlu0 %2511, %v1442_v0  }
 0x1a1   : > { %1399 = vrot.lane.b32.xlu1 %v1304_v29, %s2649_s16  ;;  %1383 = vrot.lane.b32.xlu2 %v1296_v25, %s2649_s16 }
 0x1a3   : > { %v1358_v27 = vpop.permute.xlu1 %1357 }
 0x1a4   : > { %v1443_v33 = vmul.f32 %v1358_v27, %v3120_v30  ;;  %v1823_v30 = vmul.f32 %v3314_v44, %v3089_v46 }
 0x1a9   : > { %1517 = vperm.xlu1 %2512, %v1443_v33   ;;  %1522 = vperm.xlu2 %2510, %v1444_v22  }
 0x1ab   : > { %v1366_v21 = vpop.permute.xlu2 %1365 }
 0x1ac   : > { %v1447_v36 = vmul.f32 %v1366_v21, %v3171_v17  ;;  %v3321_v17 = vld [vmem:[%s3560_s5] ss:$0 sm:$0xff] }
 0x1b1   : > { %1537 = vperm.xlu2 %2510, %v1447_v36  }
 0x1b3   : > { %v1468_v47 = vpop.permute.xlu2 %1467  ;;  %v1362_v11 = vpop.permute.xlu0 %1361 }
 0x1b4   : > { %v1628_v39 = vmul.f32 %v3309_v8, %v1468_v47  ;;  %v1445_v3 = vmul.f32 %v1362_v11, %v3145_v15 }
 0x1b6   : > { %v1855_v40 = vadd.f32 %v1823_v30, %v1628_v39  ;;  %1527 = vperm.xlu0 %2511, %v1445_v3  }
 0x1b8   : > { %v1890_v62 = vadd.f32 %v3321_v17, %v1855_v40 }
 0x1ba   : > { %v1922_v46 = vmax.f32 %v1890_v62, 0.0 }
 0x1bb   : > { %v1364_v4 = vpop.permute.xlu1 %1363 }
 0x1bc   : > { %1955 = vst.msk [vmem:[%s3331_s27] sm:$0xff] %vm1954_vm0, %v1922_v46  ;;  %v1446_v63 = vmul.f32 %v1364_v4, %v3159_v41 }
 0x1be   : > { %1532 = vperm.xlu1 %2512, %v1446_v63  }
 0x1c3   : > { %v1372_v15 = vpop.permute.xlu2 %1371 }
 0x1c4   : > { %v1450_v56 = vmul.f32 %v1372_v15, %v3210_v18 }
 0x1c6   : > { %1552 = vperm.xlu2 %2510, %v1450_v56   ;;  %v1827_v56 = vmul.f32 %v3314_v44, %v3068_v12 }
 0x1cb   : > { %v1483_v5 = vpop.permute.xlu2 %1482  ;;  %v1368_v49 = vpop.permute.xlu0 %1367 }
 0x1cc   : > { %v1631_v57 = vmul.f32 %v3309_v8, %v1483_v5  ;;  %v1448_v61 = vmul.f32 %v1368_v49, %v3183_v53 }
 0x1ce   : > { %v1858_v1 = vadd.f32 %v1826_v34, %v1631_v57  ;;  %1542 = vperm.xlu0 %2511, %v1448_v61  }
 0x1d0   : > { %v1893_v10 = vadd.f32 %v3321_v17, %v1858_v1 }
 0x1d2   : > { %v1925_v41 = vmax.f32 %v1893_v10, 0.0  ;;  %v1831_v10 = vmul.f32 %v3314_v44, %v3115_v23 }
 0x1d3   : > { %v1370_v35 = vpop.permute.xlu1 %1369  ;;  %v1390_v9 = vpop.permute.xlu2 %1389 }
 0x1d4   : > { %1958 = vst.msk [vmem:[%s3331_s27 + $0x18] sm:$0xff] %vm1954_vm0, %v1925_v41  ;;  %v1449_v18 = vmul.f32 %v1370_v35, %v3195_v37  ;;  %v1459_v7 = vmul.f32 %v1390_v9, %v3223_v50  ;;  %v1473_v0 = vpop.permute.xlu0 %1472  ;;  %v1825_v37 = vmul.f32 %v3314_v44, %v3086_v38  ;;  %v1828_v50 = vmul.f32 %v3314_v44, %v3101_v59 }
 0x1d5   : > { %v1629_v53 = vmul.f32 %v3309_v8, %v1473_v0  ;;  %v1829_v9 = vmul.f32 %v3314_v44, %v3123_v13 }
 0x1d6   : > { %1547 = vperm.xlu1 %2512, %v1449_v18   ;;  %1597 = vperm.xlu2 %2510, %v1459_v7  }
 0x1d7   : > { %v1856_v29 = vadd.f32 %v1824_v6, %v1629_v53 }
 0x1d9   : > { %v1891_v25 = vadd.f32 %v3321_v17, %v1856_v29 }
 0x1db   : > { %v1923_v45 = vmax.f32 %v1891_v25, 0.0  ;;  %v1478_v27 = vpop.permute.xlu1 %1477  ;;  %v1493_v22 = vpop.permute.xlu2 %1492 }
 0x1dc   : > { %v1630_v33 = vmul.f32 %v3309_v8, %v1478_v27  ;;  %v1633_v24 = vmul.f32 %v3309_v8, %v1493_v22  ;;  %v1386_v21 = vpop.permute.xlu0 %1385 }
 0x1dd   : > { %1956 = vst.msk [vmem:[%s3331_s27 + $0x8] sm:$0xff] %vm1954_vm0, %v1923_v45  ;;  %v1457_v36 = vmul.f32 %v1386_v21, %v3193_v2 }
 0x1de   : > { %v1857_v47 = vadd.f32 %v1825_v37, %v1630_v33  ;;  %v1860_v11 = vadd.f32 %v1828_v50, %v1633_v24  ;;  %v1108_v37 = vld [vmem:[%s2807_s18 + $0xf0] sm:$0xff]  ;;  %v1830_v50 = vmul.f32 %v3314_v44, %v3078_v31 }
 0x1df   : > { %1587 = vperm.xlu0 %2511, %v1457_v36  }
 0x1e0   : > { %v1892_v30 = vadd.f32 %v3321_v17, %v1857_v47  ;;  %v1895_v38 = vadd.f32 %v3321_v17, %v1860_v11 }
 0x1e2   : > { %v1924_v39 = vmax.f32 %v1892_v30, 0.0  ;;  %v1927_v3 = vmax.f32 %v1895_v38, 0.0 }
 0x1e3   : > { %v1388_v59 = vpop.permute.xlu1 %1387  ;;  %v1378_v40 = vpop.permute.xlu2 %1377 }
 0x1e4   : > { %1957 = vst.msk [vmem:[%s3331_s27 + $0x10] sm:$0xff] %vm1954_vm0, %v1924_v39  ;;  %v1458_v62 = vmul.f32 %v1388_v59, %v3208_v32  ;;  %v1453_v46 = vmul.f32 %v1378_v40, %v3251_v52  ;;  %v1374_v4 = vpop.permute.xlu0 %1373  ;;  %v1837_v39 = vmul.f32 %v3314_v44, %v3149_v19  ;;  %v1832_v19 = vmul.f32 %v3314_v44, %v3138_v58 }
 0x1e5   : > { %1960 = vst.msk [vmem:[%s3331_s27 + $0x28] sm:$0xff] %vm1954_vm0, %v1927_v3  ;;  %v1451_v2 = vmul.f32 %v1374_v4, %v3225_v60  ;;  %v1833_v58 = vmul.f32 %v3314_v44, %v3091_v48 }
 0x1e6   : > { %1592 = vperm.xlu1 %2512, %v1458_v62   ;;  %1567 = vperm.xlu2 %2510, %v1453_v46   ;;  %v1109_v46 = vld [vmem:[%s2807_s18 + $0xf8] sm:$0xff] }
 0x1e7   : > { %1557 = vperm.xlu0 %2511, %v1451_v2  }
 0x1eb   : > { %v1488_v63 = vpop.permute.xlu1 %1487  ;;  %v1396_v15 = vpop.permute.xlu2 %1395 }
 0x1ec   : > { %v1632_v5 = vmul.f32 %v3309_v8, %v1488_v63  ;;  %v1462_v32 = vmul.f32 %v1396_v15, %v3261_v54  ;;  %v1392_v49 = vpop.permute.xlu0 %1391 }
 0x1ed   : > { %v1460_v52 = vmul.f32 %v1392_v49, %v3235_v14  ;;  %v1107_v49 = vld [vmem:[%s2807_s18 + $0xe8] sm:$0xff] }
 0x1ee   : > { %v1859_v34 = vadd.f32 %v1827_v56, %v1632_v5  ;;  %1612 = vperm.xlu2 %2510, %v1462_v32  }
 0x1ef   : > { %1602 = vperm.xlu0 %2511, %v1460_v52  }
 0x1f0   : > { %v1894_v60 = vadd.f32 %v3321_v17, %v1859_v34 }
 0x1f2   : > { %v1926_v57 = vmax.f32 %v1894_v60, 0.0 }
 0x1f3   : > { %v1376_v61 = vpop.permute.xlu1 %1375  ;;  %v1508_v1 = vpop.permute.xlu2 %1507 }
 0x1f4   : > { %1959 = vst.msk [vmem:[%s3331_s27 + $0x20] sm:$0xff] %vm1954_vm0, %v1926_v57  ;;  %v1452_v12 = vmul.f32 %v1376_v61, %v3237_v42  ;;  %v1636_v54 = vmul.f32 %v3309_v8, %v1508_v1  ;;  %v3580_v57 = vld [vmem:[#allocation10_spill] sm:$0xff] }
 0x1f5   : > { %v1840_v61 = vmul.f32 %v3314_v44, %v3580_v57  ;;  %v3589_v57 = vld [vmem:[#allocation16_spill] sm:$0xff] }
 0x1f6   : > { %v1863_v41 = vadd.f32 %v1831_v10, %v1636_v54  ;;  %1562 = vperm.xlu1 %2512, %v1452_v12  }
 0x1f8   : > { %v1898_v14 = vadd.f32 %v3321_v17, %v1863_v41  ;;  %v1498_v35 = vpop.permute.xlu0 %1497 }
 0x1f9   : > { %v1634_v18 = vmul.f32 %v3309_v8, %v1498_v35 }
 0x1fa   : > { %v1930_v7 = vmax.f32 %v1898_v14, 0.0  ;;  %v3581_v14 = vld [vmem:[#allocation8_spill] sm:$0xff] }
 0x1fb   : > { %v1861_v0 = vadd.f32 %v1829_v9, %v1634_v18  ;;  %v1394_v23 = vpop.permute.xlu1 %1393  ;;  %v1384_v6 = vpop.permute.xlu2 %1383  ;;  %v1835_v35 = vmul.f32 %v3314_v44, %v3581_v14 }
 0x1fc   : > { %1963 = vst.msk [vmem:[%s3331_s27 + $0x40] sm:$0xff] %vm1954_vm0, %v1930_v7  ;;  %v1461_v42 = vmul.f32 %v1394_v23, %v3249_v20  ;;  %v1456_v53 = vmul.f32 %v1384_v6, %v3286_v16  ;;  %v1834_v20 = vmul.f32 %v3314_v44, %v3133_v51 }
 0x1fd   : > { %v1896_v29 = vadd.f32 %v3321_v17, %v1861_v0 }
 0x1fe   : > { %1607 = vperm.xlu1 %2512, %v1461_v42   ;;  %1582 = vperm.xlu2 %2510, %v1456_v53   ;;  %v3582_v42 = vld [vmem:[#allocation5_spill] sm:$0xff] }
 0x1ff   : > { %v1928_v25 = vmax.f32 %v1896_v29, 0.0  ;;  %v1836_v53 = vmul.f32 %v3314_v44, %v3582_v42  ;;  %v3583_v29 = vld [vmem:[#allocation18_spill] sm:$0xff] }
 0x200   : > { %v1380_v45 = vpop.permute.xlu0 %1379 }
 0x201   : > { %1961 = vst.msk [vmem:[%s3331_s27 + $0x30] sm:$0xff] %vm1954_vm0, %v1928_v25  ;;  %v1454_v13 = vmul.f32 %v1380_v45, %v3263_v55  ;;  %v1849_v25 = vmul.f32 %v3314_v44, %v3583_v29  ;;  %v3591_v29 = vld [vmem:[#allocation20_spill] sm:$0xff] }
 0x203   : > { %v1503_v27 = vpop.permute.xlu1 %1502  ;;  %v1523_v22 = vpop.permute.xlu2 %1522  ;;  %1572 = vperm.xlu0 %2511, %v1454_v13  }
 0x204   : > { %v1635_v16 = vmul.f32 %v3309_v8, %v1503_v27  ;;  %v1639_v33 = vmul.f32 %v3309_v8, %v1523_v22 }
 0x206   : > { %v1862_v24 = vadd.f32 %v1830_v50, %v1635_v16  ;;  %v1866_v21 = vadd.f32 %v1834_v20, %v1639_v33  ;;  %1812 = vperm.xlu2 %2510, %v1108_v37  }
 0x208   : > { %v1897_v55 = vadd.f32 %v3321_v17, %v1862_v24  ;;  %v1901_v36 = vadd.f32 %v3321_v17, %v1866_v21  ;;  %v1398_v47 = vpop.permute.xlu0 %1397  ;;  %v3584_v21 = vld [vmem:[#allocation11_spill] sm:$0xff] }
 0x209   : > { %v1463_v31 = vmul.f32 %v1398_v47, %v3273_v28 }
 0x20a   : > { %v1929_v11 = vmax.f32 %v1897_v55, 0.0  ;;  %v1933_v30 = vmax.f32 %v1901_v36, 0.0  ;;  %v1838_v55 = vmul.f32 %v3314_v44, %v3584_v21  ;;  %v3585_v36 = vld [vmem:[#allocation13_spill] sm:$0xff] }
 0x20b   : > { %v1382_v51 = vpop.permute.xlu1 %1381  ;;  %v1538_v38 = vpop.permute.xlu2 %1537  ;;  %1617 = vperm.xlu0 %2511, %v1463_v31   ;;  %v1843_v47 = vmul.f32 %v3314_v44, %v3585_v36  ;;  %v3593_v36 = vld [vmem:[#allocation15_spill] sm:$0xff] }
 0x20c   : > { %1962 = vst.msk [vmem:[%s3331_s27 + $0x38] sm:$0xff] %vm1954_vm0, %v1929_v11  ;;  %v1455_v3 = vmul.f32 %v1382_v51, %v3275_v43  ;;  %v1642_v59 = vmul.f32 %v3309_v8, %v1538_v38 }
 0x20d   : > { %1966 = vst.msk [vmem:[%s3331_s27 + $0x58] sm:$0xff] %vm1954_vm0, %v1933_v30 }
 0x20e   : > { %v1869_v40 = vadd.f32 %v1837_v39, %v1642_v59  ;;  %1577 = vperm.xlu1 %2512, %v1455_v3  }
 0x210   : > { %v1904_v28 = vadd.f32 %v3321_v17, %v1869_v40  ;;  %v1513_v62 = vpop.permute.xlu0 %1512 }
 0x211   : > { %v1637_v4 = vmul.f32 %v3309_v8, %v1513_v62 }
 0x212   : > { %v1936_v2 = vmax.f32 %v1904_v28, 0.0  ;;  %v3586_v28 = vld [vmem:[#allocation6_spill] sm:$0xff] }
 0x213   : > { %v1864_v63 = vadd.f32 %v1832_v19, %v1637_v4  ;;  %v1400_v43 = vpop.permute.xlu1 %1399  ;;  %1817 = vperm.xlu0 %2511, %v1109_v46   ;;  %v1839_v62 = vmul.f32 %v3314_v44, %v3586_v28 }
 0x214   : > { %1969 = vst.msk [vmem:[%s3331_s27 + $0x70] sm:$0xff] %vm1954_vm0, %v1936_v2  ;;  %v1464_v15 = vmul.f32 %v1400_v43, %v3284_v26 }
 0x215   : > { %v1899_v56 = vadd.f32 %v3321_v17, %v1864_v63 }
 0x216   : > { %1622 = vperm.xlu1 %2512, %v1464_v15   ;;  %v3587_v15 = vld [vmem:[#allocation19_spill] sm:$0xff] }
 0x217   : > { %v1931_v5 = vmax.f32 %v1899_v56, 0.0  ;;  %v1847_v56 = vmul.f32 %v3314_v44, %v3587_v15 }
 0x219   : > { %1964 = vst.msk [vmem:[%s3331_s27 + $0x48] sm:$0xff] %vm1954_vm0, %v1931_v5 }
 0x21b   : > { %v1518_v32 = vpop.permute.xlu1 %1517 }
 0x21c   : > { %v1638_v52 = vmul.f32 %v3309_v8, %v1518_v32 }
 0x21e   : > { %v1865_v34 = vadd.f32 %v1833_v58, %v1638_v52  ;;  %1807 = vperm.xlu1 %2512, %v1107_v49  }
 0x220   : > { %v1900_v60 = vadd.f32 %v3321_v17, %v1865_v34  ;;  %v1553_v26 = vpop.permute.xlu2 %1552 }
 0x221   : > { %v1645_v1 = vmul.f32 %v3309_v8, %v1553_v26 }
 0x222   : > { %v1932_v10 = vmax.f32 %v1900_v60, 0.0  ;;  %v3588_v60 = vld [vmem:[#allocation12_spill] sm:$0xff] }
 0x223   : > { %v1872_v12 = vadd.f32 %v1840_v61, %v1645_v1  ;;  %v1848_v26 = vmul.f32 %v3314_v44, %v3588_v60  ;;  %v1846_v61 = vmul.f32 %v3314_v44, %v3589_v57 }
 0x224   : > { %1965 = vst.msk [vmem:[%s3331_s27 + $0x50] sm:$0xff] %vm1954_vm0, %v1932_v10 }
 0x225   : > { %v1907_v54 = vadd.f32 %v3321_v17, %v1872_v12 }
 0x227   : > { %v1939_v48 = vmax.f32 %v1907_v54, 0.0  ;;  %v3590_v54 = vld [vmem:[#allocation14_spill] sm:$0xff] }
 0x228   : > { %v1528_v41 = vpop.permute.xlu0 %1527 }
 0x229   : > { %1972 = vst.msk [vmem:[%s3331_s27 + $0x88] sm:$0xff] %vm1954_vm0, %v1939_v48  ;;  %v1640_v9 = vmul.f32 %v3309_v8, %v1528_v41  ;;  %v1841_v48 = vmul.f32 %v3314_v44, %v3590_v54 }
 0x22b   : > { %v1867_v18 = vadd.f32 %v1835_v35, %v1640_v9 }
 0x22d   : > { %v1902_v7 = vadd.f32 %v3321_v17, %v1867_v18 }
 0x22f   : > { %v1934_v0 = vmax.f32 %v1902_v7, 0.0 }
 0x230   : > { %v1533_v23 = vpop.permute.xlu1 %1532  ;;  %v1598_v6 = vpop.permute.xlu2 %1597 }
 0x231   : > { %1967 = vst.msk [vmem:[%s3331_s27 + $0x60] sm:$0xff] %vm1954_vm0, %v1934_v0  ;;  %v1641_v45 = vmul.f32 %v3309_v8, %v1533_v23  ;;  %v1654_v13 = vmul.f32 %v3309_v8, %v1598_v6 }
 0x233   : > { %v1868_v27 = vadd.f32 %v1836_v53, %v1641_v45  ;;  %v1881_v22 = vadd.f32 %v1849_v25, %v1654_v13  ;;  %v1850_v25 = vmul.f32 %v3314_v44, %v3591_v29 }
 0x235   : > { %v1903_v37 = vadd.f32 %v3321_v17, %v1868_v27  ;;  %v1916_v50 = vadd.f32 %v3321_v17, %v1881_v22 }
 0x237   : > { %v1935_v20 = vmax.f32 %v1903_v37, 0.0  ;;  %v1948_v16 = vmax.f32 %v1916_v50, 0.0  ;;  %v3592_v50 = vld [vmem:[#allocation7_spill] sm:$0xff] }
 0x239   : > { %1968 = vst.msk [vmem:[%s3331_s27 + $0x68] sm:$0xff] %vm1954_vm0, %v1935_v20  ;;  %v1842_v20 = vmul.f32 %v3314_v44, %v3592_v50 }
 0x23a   : > { %1981 = vst.msk [vmem:[%s3331_s27 + $0xd0] sm:$0xff] %vm1954_vm0, %v1948_v16 }
 0x240   : > { %v1568_v33 = vpop.permute.xlu2 %1567  ;;  %v1543_v24 = vpop.permute.xlu0 %1542 }
 0x241   : > { %v1648_v31 = vmul.f32 %v3309_v8, %v1568_v33  ;;  %v1643_v11 = vmul.f32 %v3309_v8, %v1543_v24 }
 0x243   : > { %v1875_v30 = vadd.f32 %v1843_v47, %v1648_v31  ;;  %v1870_v51 = vadd.f32 %v1838_v55, %v1643_v11  ;;  %v1851_v47 = vmul.f32 %v3314_v44, %v3593_v36 }
 0x245   : > { %v1910_v38 = vadd.f32 %v3321_v17, %v1875_v30  ;;  %v1905_v39 = vadd.f32 %v3321_v17, %v1870_v51 }
 0x247   : > { %v1942_v3 = vmax.f32 %v1910_v38, 0.0  ;;  %v1937_v59 = vmax.f32 %v1905_v39, 0.0  ;;  %v3594_v38 = vld [vmem:[#allocation17_spill] sm:$0xff] }
 0x248   : > { %v1548_v40 = vpop.permute.xlu1 %1547  ;;  %v3468_v63 = vpop.permute.xlu2 %1612  ;;  %v1844_v39 = vmul.f32 %v3314_v44, %v3594_v38 }
 0x249   : > { %1975 = vst.msk [vmem:[%s3331_s27 + $0xa0] sm:$0xff] %vm1954_vm0, %v1942_v3  ;;  %v1644_v46 = vmul.f32 %v3309_v8, %v1548_v40 }
 0x24a   : > { %1970 = vst.msk [vmem:[%s3331_s27 + $0x78] sm:$0xff] %vm1954_vm0, %v1937_v59 }
 0x24b   : > { %v1871_v19 = vadd.f32 %v1839_v62, %v1644_v46 }
 0x24d   : > { %v1906_v4 = vadd.f32 %v3321_v17, %v1871_v19 }
 0x24f   : > { %v1938_v2 = vmax.f32 %v1906_v4, 0.0 }
 0x251   : > { %1971 = vst.msk [vmem:[%s3331_s27 + $0x80] sm:$0xff] %vm1954_vm0, %v1938_v2  ;;  %v1588_v43 = vpop.permute.xlu0 %1587 }
 0x252   : > { %v1652_v5 = vmul.f32 %v3309_v8, %v1588_v43 }
 0x254   : > { %v1879_v32 = vadd.f32 %v1847_v56, %v1652_v5  ;;  %v3595_v56 = vld [vmem:[#allocation9_spill] sm:$0xff] }
 0x255   : > { %v1845_v5 = vmul.f32 %v3314_v44, %v3595_v56 }
 0x256   : > { %v1914_v49 = vadd.f32 %v3321_v17, %v1879_v32 }
 0x258   : > { %v1946_v58 = vmax.f32 %v1914_v49, 0.0  ;;  %v1593_v52 = vpop.permute.xlu1 %1592  ;;  %v1583_v34 = vpop.permute.xlu2 %1582 }
 0x259   : > { %v1653_v1 = vmul.f32 %v3309_v8, %v1593_v52  ;;  %v1651_v10 = vmul.f32 %v3309_v8, %v1583_v34  ;;  %v1558_v12 = vpop.permute.xlu0 %1557 }
 0x25a   : > { %1979 = vst.msk [vmem:[%s3331_s27 + $0xc0] sm:$0xff] %vm1954_vm0, %v1946_v58  ;;  %v1646_v41 = vmul.f32 %v3309_v8, %v1558_v12 }
 0x25b   : > { %v1880_v14 = vadd.f32 %v1848_v26, %v1653_v1  ;;  %v1878_v35 = vadd.f32 %v1846_v61, %v1651_v10 }
 0x25c   : > { %v1873_v9 = vadd.f32 %v1841_v48, %v1646_v41  ;;  %v1657_v41 = vmul.f32 %v3309_v8, %v3468_v63 }
 0x25d   : > { %v1915_v18 = vadd.f32 %v3321_v17, %v1880_v14  ;;  %v1913_v7 = vadd.f32 %v3321_v17, %v1878_v35 }
 0x25e   : > { %v1908_v0 = vadd.f32 %v3321_v17, %v1873_v9 }
 0x25f   : > { %v1947_v23 = vmax.f32 %v1915_v18, 0.0  ;;  %v1945_v6 = vmax.f32 %v1913_v7, 0.0 }
 0x260   : > { %v1940_v42 = vmax.f32 %v1908_v0, 0.0  ;;  %v1813_v62 = vpop.permute.xlu2 %1812 }
 0x261   : > { %1980 = vst.msk [vmem:[%s3331_s27 + $0xc8] sm:$0xff] %vm1954_vm0, %v1947_v23  ;;  %v1603_v53 = vpop.permute.xlu0 %1602  ;;  %v1853_v4 = vmul.f32 %v3314_v44, %v1813_v62 }
 0x262   : > { %1978 = vst.msk [vmem:[%s3331_s27 + $0xb8] sm:$0xff] %vm1954_vm0, %v1945_v6  ;;  %v1655_v45 = vmul.f32 %v3309_v8, %v1603_v53 }
 0x263   : > { %1973 = vst.msk [vmem:[%s3331_s27 + $0x90] sm:$0xff] %vm1954_vm0, %v1940_v42 }
 0x264   : > { %v1882_v13 = vadd.f32 %v1850_v25, %v1655_v45 }
 0x266   : > { %v1917_v27 = vadd.f32 %v3321_v17, %v1882_v13 }
 0x268   : > { %v1949_v22 = vmax.f32 %v1917_v27, 0.0  ;;  %v1563_v37 = vpop.permute.xlu1 %1562 }
 0x269   : > { %v1647_v16 = vmul.f32 %v3309_v8, %v1563_v37 }
 0x26a   : > { %1982 = vst.msk [vmem:[%s3331_s27 + $0xd8] sm:$0xff] %vm1954_vm0, %v1949_v22 }
 0x26b   : > { %v1874_v33 = vadd.f32 %v1842_v20, %v1647_v16 }
 0x26d   : > { %v1909_v24 = vadd.f32 %v3321_v17, %v1874_v33 }
 0x26f   : > { %v1941_v21 = vmax.f32 %v1909_v24, 0.0 }
 0x270   : > { %v1608_v55 = vpop.permute.xlu1 %1607 }
 0x271   : > { %1974 = vst.msk [vmem:[%s3331_s27 + $0x98] sm:$0xff] %vm1954_vm0, %v1941_v21  ;;  %v1656_v31 = vmul.f32 %v3309_v8, %v1608_v55 }
 0x273   : > { %v1883_v11 = vadd.f32 %v1851_v47, %v1656_v31 }
 0x275   : > { %v1918_v30 = vadd.f32 %v3321_v17, %v1883_v11  ;;  %v1573_v51 = vpop.permute.xlu0 %1572 }
 0x276   : > { %v1649_v3 = vmul.f32 %v3309_v8, %v1573_v51 }
 0x277   : > { %v1950_v59 = vmax.f32 %v1918_v30, 0.0 }
 0x278   : > { %v1876_v40 = vadd.f32 %v1844_v39, %v1649_v3 }
 0x279   : > { %1983 = vst.msk [vmem:[%s3331_s27 + $0xe0] sm:$0xff] %vm1954_vm0, %v1950_v59 }
 0x27a   : > { %v1911_v28 = vadd.f32 %v3321_v17, %v1876_v40 }
 0x27c   : > { %v1943_v46 = vmax.f32 %v1911_v28, 0.0 }
 0x27d   : > { %v1618_v19 = vpop.permute.xlu0 %1617 }
 0x27e   : > { %1976 = vst.msk [vmem:[%s3331_s27 + $0xa8] sm:$0xff] %vm1954_vm0, %v1943_v46  ;;  %v1658_v2 = vmul.f32 %v3309_v8, %v1618_v19 }
 0x280   : > { %v1885_v43 = vadd.f32 %v1853_v4, %v1658_v2  ;;  %v1578_v15 = vpop.permute.xlu1 %1577 }
 0x281   : > { %v1650_v32 = vmul.f32 %v3309_v8, %v1578_v15 }
 0x282   : > { %v1920_v49 = vadd.f32 %v3321_v17, %v1885_v43 }
 0x283   : > { %v1877_v58 = vadd.f32 %v1845_v5, %v1650_v32 }
 0x284   : > { %v1952_v52 = vmax.f32 %v1920_v49, 0.0 }
 0x285   : > { %v1912_v34 = vadd.f32 %v3321_v17, %v1877_v58  ;;  %v1818_v60 = vpop.permute.xlu0 %1817 }
 0x286   : > { %1985 = vst.msk [vmem:[%s3331_s27 + $0xf0] sm:$0xff] %vm1954_vm0, %v1952_v52  ;;  %v1854_v61 = vmul.f32 %v3314_v44, %v1818_v60 }
 0x287   : > { %v1944_v26 = vmax.f32 %v1912_v34, 0.0 }
 0x288   : > { %v1623_v57 = vpop.permute.xlu1 %1622 }
 0x289   : > { %1977 = vst.msk [vmem:[%s3331_s27 + $0xb0] sm:$0xff] %vm1954_vm0, %v1944_v26  ;;  %v1659_v1 = vmul.f32 %v3309_v8, %v1623_v57 }
 0x28b   : > { %v1886_v10 = vadd.f32 %v1854_v61, %v1659_v1 }
 0x28d   : > { %v1921_v12 = vadd.f32 %v3321_v17, %v1886_v10 }
 0x28f   : > { %v1953_v54 = vmax.f32 %v1921_v12, 0.0 }
 0x290   : > { %v1808_v48 = vpop.permute.xlu1 %1807 }
 0x291   : > { %1986 = vst.msk [vmem:[%s3331_s27 + $0xf8] sm:$0xff] %vm1954_vm0, %v1953_v54  ;;  %v1852_v14 = vmul.f32 %v3314_v44, %v1808_v48 }
 0x293   : > { %v1884_v35 = vadd.f32 %v1852_v14, %v1657_v41 }
 0x295   : > { %v1919_v9 = vadd.f32 %v3321_v17, %v1884_v35 }
 0x297   : > { %v1951_v18 = vmax.f32 %v1919_v9, 0.0 }
 0x299   : > { %1984 = vst.msk [vmem:[%s3331_s27 + $0xe8] sm:$0xff] %vm1954_vm0, %v1951_v18 }
 0x29a PF: > { %p16_p7 = scmp.ge.s32.totalorder %s2705_s26, 4   ;;  %s3596_s21 = smov %s2636_s22 }
 0x29b   : > { %s3597_s22 = smov %s2640_s23  ;;  %s3598_s23 = smov %s2715_s29 }
 0x29c   : > { %s3599_s24 = smov %s2705_s26  ;;  %18 = sbr.rel (!%p16_p7) target bundleno = 3 (0x3), region = 87 }
 0x2a1   :  { %2009 = vsyncpa [#allocation3], 1 }
 0x2a2   :  { %2011 = vsyncpa [#allocation3 + $0x1], 1 }

</bundles_post_ra>
